<compile_context>
chip_gen: v5e
topology: v5e:2x2
jax: 0.10.0
libtpu: 0.0.40
codegen_flags: <defaults>
</compile_context>

<pallas_src>
import functools
import math

import jax
import jax.numpy as jnp
from jax import lax
from jax.experimental import pallas as pl
from jax.experimental.pallas import tpu as pltpu

_VMEM_LIMIT = 48 * 1024 * 1024  # safe on v5e/v6e (128 MiB) and v7x (64 MiB)


def _pick_tile(dim, target, align=8):
    """Largest `align`-multiple divisor of dim that is <= target.

    Returns the full dim if dim <= target or no aligned divisor exists
    (the full dimension is always layout-legal).
    """
    if dim <= target:
        return dim
    t = (target // align) * align
    while t >= align:
        if dim % t == 0:
            return t
        t -= align
    return dim


def _softmax_exp_dtype():
    """bf16 exp on v6e/v7x (bf16 EUP ~2x throughput); f32 elsewhere/unknown."""
    try:
        kind = jax.devices()[0].device_kind.lower()
    except Exception:
        return jnp.float32
    if ("v6" in kind) or ("v7" in kind) or ("7x" in kind):
        return jnp.bfloat16
    return jnp.float32


# ----------------------------------------------------------------------------
# Kernel 1: tiled dense linear layer  out = x @ w_t + b
#   x   : (M, Din)   f32 or bf16 (cast to bf16 per-tile inside the kernel)
#   w_t : (Din, Dout) bf16  (pre-transposed PyTorch weight, lane-dense RHS)
#   b   : (1, Dout)  f32
# Grid (M//tm, Dout//tn, Din//tk); f32 VMEM accumulator; reduction axis last.
# ----------------------------------------------------------------------------
def _linear_kernel(x_ref, wt_ref, b_ref, o_ref, acc_ref):
    k = pl.program_id(2)

    @pl.when(k == 0)
    def _init():
        acc_ref[...] = jnp.zeros_like(acc_ref)

    # In-kernel cast: VPU convert hides under the MXU; avoids a separate
    # XLA cast pass (and HBM round trip) over the activations.
    x = x_ref[...].astype(jnp.bfloat16)
    acc_ref[...] += jnp.dot(x, wt_ref[...], preferred_element_type=jnp.float32)

    @pl.when(k == pl.num_programs(2) - 1)
    def _finalize():
        o_ref[...] = (acc_ref[...] + b_ref[...]).astype(o_ref.dtype)


def linear(x, w_t, b2, *, out_dtype=jnp.float32, tm=512, tn=512, tk=1024):
    """x: (M, Din) f32/bf16; w_t: (Din, Dout) bf16; b2: (1, Dout) f32."""
    m, din = x.shape
    dout = w_t.shape[1]
    tm = _pick_tile(m, tm, align=8)      # sublane dim of x / out blocks
    tn = _pick_tile(dout, tn, align=128)  # lane dim of w_t / b / out blocks
    tk = _pick_tile(din, tk, align=128)   # lane dim of x, sublane dim of w_t
    grid = (m // tm, dout // tn, din // tk)
    cost = pl.CostEstimate(
        flops=2 * m * din * dout,
        transcendentals=0,
        bytes_accessed=(m * din * x.dtype.itemsize + din * dout * 2 + dout * 4
                        + m * dout * jnp.dtype(out_dtype).itemsize),
    )
    return pl.pallas_call(
        _linear_kernel,
        out_shape=jax.ShapeDtypeStruct((m, dout), out_dtype),
        grid_spec=pltpu.PrefetchScalarGridSpec(
            num_scalar_prefetch=0,
            grid=grid,
            in_specs=[
                pl.BlockSpec((tm, tk), lambda i, j, k: (i, k)),
                pl.BlockSpec((tk, tn), lambda i, j, k: (k, j)),
                pl.BlockSpec((1, tn), lambda i, j, k: (0, j)),
            ],
            out_specs=pl.BlockSpec((tm, tn), lambda i, j, k: (i, j)),
            scratch_shapes=[pltpu.VMEM((tm, tn), jnp.float32)],
        ),
        compiler_params=pltpu.CompilerParams(
            dimension_semantics=("parallel", "parallel", "arbitrary"),
            vmem_limit_bytes=_VMEM_LIMIT,
        ),
        cost_estimate=cost,
    )(x, w_t, b2)


# ----------------------------------------------------------------------------
# Kernel 2: multi-head scaled-dot-product attention, flash-style over k.
#   q    : (1, tq, H*d_k) bf16   (heads packed in the lane dim; 1/sqrt(d_k)
#                                 already folded into the q projection)
#   k    : (1, tk, H*d_k) bf16
#   v    : (1, tk, H*d_v) bf16
#   mask : (1, tq, tk)    bool/int   (nonzero == masked)
#   out  : (1, tq, H*d_v) bf16   (lane-dense, feeds W_out directly)
# Scratch: running max / denom per head, lane-packed f32 accumulator.
# ----------------------------------------------------------------------------
def _attn_kernel(q_ref, k_ref, v_ref, mask_ref, o_ref,
                 m_sc, l_sc, acc_sc, *, num_heads, d_k, d_v, exp_dtype):
    kb = pl.program_id(2)

    @pl.when(kb == 0)
    def _init():
        m_sc[...] = jnp.full_like(m_sc, -jnp.inf)
        l_sc[...] = jnp.zeros_like(l_sc)
        acc_sc[...] = jnp.zeros_like(acc_sc)

    q = q_ref[0]                      # (tq, H*d_k) bf16
    k = k_ref[0]                      # (tk, H*d_k) bf16
    v = v_ref[0]                      # (tk, H*d_v) bf16

    m_raw = mask_ref[0]               # (tq, tk) bool or int
    masked = m_raw if m_raw.dtype == jnp.bool_ else (m_raw != 0)
    # One additive bias per grid step (single vsel) shared by every head.
    # Note: masked scores become s - 10000 instead of exactly -10000; for
    # partially-masked rows this is numerically identical after softmax.
    bias = jnp.where(masked, jnp.float32(-10000.0), jnp.float32(0.0))

    # Static (unrolled) head loop: per-head 2-D MXU matmuls; dot_general
    # contracts the last dims directly so no k.T / XLU transpose is emitted.
    for h in range(num_heads):
        qh = q[:, h * d_k:(h + 1) * d_k]                       # (tq, d_k)
        kh = k[:, h * d_k:(h + 1) * d_k]                       # (tk, d_k)
        vh = v[:, h * d_v:(h + 1) * d_v]                       # (tk, d_v)

        s = lax.dot_general(qh, kh, (((1,), (1,)), ((), ())),
                            preferred_element_type=jnp.float32) + bias

        m_prev = m_sc[h]                                       # (tq, 1)
        m_new = jnp.maximum(m_prev, jnp.max(s, axis=-1, keepdims=True))
        alpha = jnp.exp(m_prev - m_new)                        # f32, (tq,1)
        # bf16 exponent on v6e/v7x (EUP-bound at small head dims); f32 on v5e.
        p = jnp.exp((s - m_new).astype(exp_dtype))             # (tq, tk)
        l_sc[h] = alpha * l_sc[h] + jnp.sum(
            p, axis=-1, keepdims=True, dtype=jnp.float32)
        acc_sc[:, h * d_v:(h + 1) * d_v] = (
            alpha * acc_sc[:, h * d_v:(h + 1) * d_v]
            + jnp.dot(p.astype(jnp.bfloat16), vh,
                      preferred_element_type=jnp.float32))
        m_sc[h] = m_new

    @pl.when(kb == pl.num_programs(2) - 1)
    def _finalize():
        # Assemble the full (tq, H*d_v) slab and do ONE lane-dense store
        # instead of H masked d_v-wide partial stores.
        pieces = []
        for h in range(num_heads):
            inv_l = pl.reciprocal(l_sc[h], approx=True)        # EUP slot
            pieces.append(acc_sc[:, h * d_v:(h + 1) * d_v] * inv_l)
        o_ref[0] = jnp.concatenate(pieces, axis=-1).astype(o_ref.dtype)


def attention(q, k, v, mask, *, num_heads, d_k, d_v, tq=256, tk=256):
    """q: (N, q_len, H*d_k) bf16; k/v: (N, k_len, H*d) bf16; mask: (N,q,k)."""
    n, q_len, hdk = q.shape
    k_len = k.shape[1]
    hdv = v.shape[2]
    tq = _pick_tile(q_len, tq, align=8)     # sublane dim of q / out / mask
    tk = _pick_tile(k_len, tk, align=128)   # lane dim of mask, sublane of k/v
    # Keep >= 2 blocks on the parallel axes so both v7x TensorCores get work.
    while (n * (q_len // tq) < 2 and tq >= 16
           and q_len % (tq // 2) == 0 and (tq // 2) % 8 == 0):
        tq //= 2
    grid = (n, q_len // tq, k_len // tk)
    exp_dtype = _softmax_exp_dtype()
    kernel = functools.partial(_attn_kernel, num_heads=num_heads,
                               d_k=d_k, d_v=d_v, exp_dtype=exp_dtype)
    cost = pl.CostEstimate(
        flops=2 * n * num_heads * q_len * k_len * (d_k + d_v),
        transcendentals=n * num_heads * q_len * k_len,
        bytes_accessed=((n * q_len * hdk + n * k_len * hdk + n * k_len * hdv
                         + n * q_len * hdv) * 2 + n * q_len * k_len),
    )
    # TODO(synk): add pipeline_mode=pl.Buffered(3) on K/V/mask specs if xprof
    #             shows exposed DMA along the k axis.
    return pl.pallas_call(
        kernel,
        out_shape=jax.ShapeDtypeStruct((n, q_len, hdv), jnp.bfloat16),
        grid_spec=pltpu.PrefetchScalarGridSpec(
            num_scalar_prefetch=0,
            grid=grid,
            in_specs=[
                pl.BlockSpec((1, tq, hdk), lambda b, qi, ki: (b, qi, 0)),
                pl.BlockSpec((1, tk, hdk), lambda b, qi, ki: (b, ki, 0)),
                pl.BlockSpec((1, tk, hdv), lambda b, qi, ki: (b, ki, 0)),
                pl.BlockSpec((1, tq, tk), lambda b, qi, ki: (b, qi, ki)),
            ],
            out_specs=pl.BlockSpec((1, tq, hdv), lambda b, qi, ki: (b, qi, 0)),
            scratch_shapes=[
                pltpu.VMEM((num_heads, tq, 1), jnp.float32),   # running max
                pltpu.VMEM((num_heads, tq, 1), jnp.float32),   # running denom
                pltpu.VMEM((tq, hdv), jnp.float32),            # lane-packed acc
            ],
        ),
        compiler_params=pltpu.CompilerParams(
            dimension_semantics=("parallel", "parallel", "arbitrary"),
            vmem_limit_bytes=_VMEM_LIMIT,
        ),
        cost_estimate=cost,
    )(q, k, v, mask)


# ----------------------------------------------------------------------------
# Full forward pass (matches MultiHeadAttention.forward, p=0.0).
# ----------------------------------------------------------------------------
def multi_head_attention(params, Q, K, V, attn_mask, *, d_k, d_v, num_heads):
    n, q_len, d_model = Q.shape
    k_len = K.shape[1]
    hdk = num_heads * d_k
    hdv = num_heads * d_v

    # Input projections (tiled, pipelined, bf16 MXU / f32 accumulate).
    # f32 activations go straight into the kernel (cast happens per-tile).
    q_p = linear(Q.reshape(n * q_len, d_model), params["wq_wt"], params["wq_b"],
                 out_dtype=jnp.bfloat16).reshape(n, q_len, hdk)
    k_p = linear(K.reshape(n * k_len, d_model), params["wk_wt"], params["wk_b"],
                 out_dtype=jnp.bfloat16).reshape(n, k_len, hdk)
    v_p = linear(V.reshape(n * k_len, d_model), params["wv_wt"], params["wv_b"],
                 out_dtype=jnp.bfloat16).reshape(n, k_len, hdv)

    # Heads stay packed in the lane dim -> no HBM transposes around attention.
    # The bool/int mask is passed straight through (no dtype-cast pass).
    ctx = attention(q_p, k_p, v_p, attn_mask,
                    num_heads=num_heads, d_k=d_k, d_v=d_v)  # (n, q_len, hdv)

    # Output projection (lane-dense bf16 input, f32 output).
    out = linear(ctx.reshape(n * q_len, hdv), params["wo_wt"], params["wo_b"],
                 out_dtype=jnp.float32)
    return out.reshape(n, q_len, d_model)


# ----------------------------------------------------------------------------
# Deterministic parameter init (mirrors nn.init.normal_ + default Linear bias).
# Weights are stored pre-transposed (Din, Dout); W_Q's weight AND bias are
# pre-multiplied by 1/sqrt(d_k), so the score computation needs no scale --
# the overall forward math is identical to the PyTorch module.
# ----------------------------------------------------------------------------
def init_params(key, d_k, d_v, d_model, num_heads):
    ks = jax.random.split(key, 8)
    std_qk = math.sqrt(2.0 / (d_model + d_k))
    std_v = math.sqrt(2.0 / (d_model + d_v))
    bnd_in = 1.0 / math.sqrt(d_model)
    bnd_out = 1.0 / math.sqrt(d_v * num_heads)
    scale = 1.0 / math.sqrt(d_k)

    def w(k, dout, din, std):   # PyTorch (Dout, Din) draw, then pre-transpose
        return (jax.random.normal(k, (dout, din), jnp.float32) * std).T

    def b(k, n_out, bound):
        return jax.random.uniform(k, (1, n_out), jnp.float32, -bound, bound)

    return {
        "wq_wt": (w(ks[0], d_k * num_heads, d_model, std_qk)
                  * scale).astype(jnp.bfloat16),
        "wk_wt": w(ks[1], d_k * num_heads, d_model, std_qk).astype(jnp.bfloat16),
        "wv_wt": w(ks[2], d_v * num_heads, d_model, std_v).astype(jnp.bfloat16),
        "wo_wt": w(ks[3], d_model, d_v * num_heads, std_v).astype(jnp.bfloat16),
        "wq_b": b(ks[4], d_k * num_heads, bnd_in) * scale,
        "wk_b": b(ks[5], d_k * num_heads, bnd_in),
        "wv_b": b(ks[6], d_v * num_heads, bnd_in),
        "wo_b": b(ks[7], d_model, bnd_out),
    }


# Pure-JAX reference (same bf16-rounded, pre-scaled weights) for sanity check.
def _reference(params, Q, K, V, attn_mask, *, d_k, d_v, num_heads):
    n, q_len, _ = Q.shape
    k_len = K.shape[1]
    q = Q @ params["wq_wt"].astype(jnp.float32) + params["wq_b"][0]  # pre-scaled
    k = K @ params["wk_wt"].astype(jnp.float32) + params["wk_b"][0]
    v = V @ params["wv_wt"].astype(jnp.float32) + params["wv_b"][0]
    qh = q.reshape(n, q_len, num_heads, d_k).transpose(0, 2, 1, 3)
    kh = k.reshape(n, k_len, num_heads, d_k).transpose(0, 2, 1, 3)
    vh = v.reshape(n, k_len, num_heads, d_v).transpose(0, 2, 1, 3)
    s = jnp.einsum("nhqd,nhkd->nhqk", qh, kh)  # no /sqrt(d_k): folded into W_Q
    s = jnp.where(attn_mask[:, None, :, :].astype(bool), -10000.0, s)
    p = jax.nn.softmax(s, axis=-1)
    o = jnp.einsum("nhqk,nhkd->nhqd", p, vh)
    o = o.transpose(0, 2, 1, 3).reshape(n, q_len, num_heads * d_v)
    return o @ params["wo_wt"].astype(jnp.float32) + params["wo_b"][0]


if __name__ == "__main__":
    # small shapes
    N, q_len, k_len = 2, 8, 8
    d_model, d_k, d_v, num_heads = 32, 8, 8, 4

    key = jax.random.PRNGKey(0)
    kp, kq, kk, kv, km = jax.random.split(key, 5)

    params = init_params(kp, d_k, d_v, d_model, num_heads)
    Q = jax.random.normal(kq, (N, q_len, d_model), jnp.float32)
    K = jax.random.normal(kk, (N, k_len, d_model), jnp.float32)
    V = jax.random.normal(kv, (N, k_len, d_model), jnp.float32)
    # boolean mask (True == masked out), shape (N, q_len, k_len)
    attn_mask = jax.random.bernoulli(km, p=0.2, shape=(N, q_len, k_len))

    fwd = jax.jit(functools.partial(
        multi_head_attention, d_k=d_k, d_v=d_v, num_heads=num_heads))
    out = fwd(params, Q, K, V, attn_mask)
    jax.block_until_ready(out)

    assert out.shape == (N, q_len, d_model), out.shape

    ref = _reference(params, Q, K, V, attn_mask,
                     d_k=d_k, d_v=d_v, num_heads=num_heads)
    err = float(jnp.max(jnp.abs(out - ref)))
    assert err < 2e-1, f"max abs err vs reference: {err}"

    print("KERNEL_OK")
</pallas_src>

<mosaic_0001>
module attributes {stable_mosaic.version = 11 : i64} {
  func.func @_linear_kernel(%arg0: i32, %arg1: i32, %arg2: i32, %arg3: memref<16x32xf32, #tpu.memory_space<vmem>>, %arg4: memref<32x32xbf16, #tpu.memory_space<vmem>>, %arg5: memref<1x32xf32, #tpu.memory_space<vmem>>, %arg6: memref<16x32xbf16, #tpu.memory_space<vmem>>, %arg7: memref<16x32xf32, #tpu.memory_space<vmem>>) attributes {dimension_semantics = [#tpu.dimension_semantics<parallel>, #tpu.dimension_semantics<parallel>, #tpu.dimension_semantics<arbitrary>], iteration_bounds = array<i64: 1, 1, 1>, scalar_prefetch = 0 : i64, scratch_operands = 1 : i64, tpu.core_type = #tpu.core_type<tc>, window_params = [{transform_indices = @transform_0, window_bounds = array<i64: 16, 32>}, {transform_indices = @transform_1, window_bounds = array<i64: 32, 32>}, {transform_indices = @transform_2, window_bounds = array<i64: 1, 32>}, {transform_indices = @transform_3, window_bounds = array<i64: 16, 32>}]} {
    %c0_i32 = arith.constant 0 : i32
    %0 = arith.cmpi eq, %arg2, %c0_i32 : i32
    %1 = arith.extui %0 : i1 to i32
    %c0_i32_0 = arith.constant 0 : i32
    %2 = arith.cmpi ne, %1, %c0_i32_0 : i32
    scf.if %2 {
      %cst_10 = arith.constant 0.000000e+00 : f32
      %13 = vector.broadcast %cst_10 : f32 to vector<16x32xf32>
      %c0_11 = arith.constant 0 : index
      %c0_12 = arith.constant 0 : index
      %14 = vector.load %arg7[%c0_11, %c0_12] : memref<16x32xf32, #tpu.memory_space<vmem>>, vector<16x32xf32>
      tpu.vector_store %arg7[%c0_11, %c0_12], %13 {strides = array<i32>} : memref<16x32xf32, #tpu.memory_space<vmem>>, vector<16x32xf32>,
    } else {
    }
    %c0 = arith.constant 0 : index
    %c0_1 = arith.constant 0 : index
    %3 = vector.load %arg3[%c0, %c0_1] : memref<16x32xf32, #tpu.memory_space<vmem>>, vector<16x32xf32>
    %4 = arith.truncf %3 : vector<16x32xf32> to vector<16x32xbf16>
    %c0_2 = arith.constant 0 : index
    %c0_3 = arith.constant 0 : index
    %5 = vector.load %arg7[%c0_2, %c0_3] : memref<16x32xf32, #tpu.memory_space<vmem>>, vector<16x32xf32>
    %c0_4 = arith.constant 0 : index
    %c0_5 = arith.constant 0 : index
    %6 = vector.load %arg4[%c0_4, %c0_5] : memref<32x32xbf16, #tpu.memory_space<vmem>>, vector<32x32xbf16>
    %cst = arith.constant dense<0.000000e+00> : vector<16x32xf32>
    %7 = tpu.matmul %4, %6, %cst {dimension_numbers = #tpu.dot_dimension_numbers<[1], [0], [0], [1], [0, 0, 1, 1], [], []>} : vector<16x32xbf16>, vector<32x32xbf16>, vector<16x32xf32> -> vector<16x32xf32>
    %8 = arith.addf %5, %7 : vector<16x32xf32>
    %c0_6 = arith.constant 0 : index
    %c0_7 = arith.constant 0 : index
    %9 = vector.load %arg7[%c0_6, %c0_7] : memref<16x32xf32, #tpu.memory_space<vmem>>, vector<16x32xf32>
    tpu.vector_store %arg7[%c0_6, %c0_7], %8 {strides = array<i32>} : memref<16x32xf32, #tpu.memory_space<vmem>>, vector<16x32xf32>,
    %c0_i32_8 = arith.constant 0 : i32
    %10 = arith.cmpi eq, %arg2, %c0_i32_8 : i32
    %11 = arith.extui %10 : i1 to i32
    %c0_i32_9 = arith.constant 0 : i32
    %12 = arith.cmpi ne, %11, %c0_i32_9 : i32
    scf.if %12 {
      %c0_10 = arith.constant 0 : index
      %c0_11 = arith.constant 0 : index
      %13 = vector.load %arg7[%c0_10, %c0_11] : memref<16x32xf32, #tpu.memory_space<vmem>>, vector<16x32xf32>
      %c0_12 = arith.constant 0 : index
      %c0_13 = arith.constant 0 : index
      %14 = vector.load %arg5[%c0_12, %c0_13] : memref<1x32xf32, #tpu.memory_space<vmem>>, vector<1x32xf32>
      %15 = vector.broadcast %14 : vector<1x32xf32> to vector<16x32xf32>
      %16 = arith.addf %13, %15 : vector<16x32xf32>
      %17 = arith.truncf %16 : vector<16x32xf32> to vector<16x32xbf16>
      %c0_14 = arith.constant 0 : index
      %c0_15 = arith.constant 0 : index
      %18 = vector.load %arg6[%c0_14, %c0_15] : memref<16x32xbf16, #tpu.memory_space<vmem>>, vector<16x32xbf16>
      tpu.vector_store %arg6[%c0_14, %c0_15], %17 {strides = array<i32>} : memref<16x32xbf16, #tpu.memory_space<vmem>>, vector<16x32xbf16>,
    } else {
    }
    return
  }
  func.func @transform_0(%arg0: i32, %arg1: i32, %arg2: i32) -> (i32, i32) {
    %c0_i32 = arith.constant 0 : i32
    return %arg0, %arg2 : i32, i32
  }
  func.func @transform_1(%arg0: i32, %arg1: i32, %arg2: i32) -> (i32, i32) {
    %c0_i32 = arith.constant 0 : i32
    return %arg2, %arg1 : i32, i32
  }
  func.func @transform_2(%arg0: i32, %arg1: i32, %arg2: i32) -> (i32, i32) {
    %c0_i32 = arith.constant 0 : i32
    %c0_i32_0 = arith.constant 0 : i32
    return %c0_i32, %arg1 : i32, i32
  }
  func.func @transform_3(%arg0: i32, %arg1: i32, %arg2: i32) -> (i32, i32) {
    %c0_i32 = arith.constant 0 : i32
    return %arg0, %arg1 : i32, i32
  }
}

module attributes {stable_mosaic.version = 11 : i64} {
  func.func @_linear_kernel(%arg0: i32, %arg1: i32, %arg2: i32, %arg3: memref<16x32xf32, #tpu.memory_space<vmem>>, %arg4: memref<32x32xbf16, #tpu.memory_space<vmem>>, %arg5: memref<1x32xf32, #tpu.memory_space<vmem>>, %arg6: memref<16x32xbf16, #tpu.memory_space<vmem>>, %arg7: memref<16x32xf32, #tpu.memory_space<vmem>>) attributes {dimension_semantics = [#tpu.dimension_semantics<parallel>, #tpu.dimension_semantics<parallel>, #tpu.dimension_semantics<arbitrary>], iteration_bounds = array<i64: 1, 1, 1>, scalar_prefetch = 0 : i64, scratch_operands = 1 : i64, tpu.core_type = #tpu.core_type<tc>, window_params = [{transform_indices = @transform_0, window_bounds = array<i64: 16, 32>}, {transform_indices = @transform_1, window_bounds = array<i64: 32, 32>}, {transform_indices = @transform_2, window_bounds = array<i64: 1, 32>}, {transform_indices = @transform_3, window_bounds = array<i64: 16, 32>}]} {
    %c0_i32 = arith.constant 0 : i32
    %0 = arith.cmpi eq, %arg2, %c0_i32 : i32
    %1 = arith.extui %0 : i1 to i32
    %c0_i32_0 = arith.constant 0 : i32
    %2 = arith.cmpi ne, %1, %c0_i32_0 : i32
    scf.if %2 {
      %cst_10 = arith.constant 0.000000e+00 : f32
      %13 = vector.broadcast %cst_10 : f32 to vector<16x32xf32>
      %c0_11 = arith.constant 0 : index
      %c0_12 = arith.constant 0 : index
      %14 = vector.load %arg7[%c0_11, %c0_12] : memref<16x32xf32, #tpu.memory_space<vmem>>, vector<16x32xf32>
      tpu.vector_store %arg7[%c0_11, %c0_12], %13 {strides = array<i32>} : memref<16x32xf32, #tpu.memory_space<vmem>>, vector<16x32xf32>,
    } else {
    }
    %c0 = arith.constant 0 : index
    %c0_1 = arith.constant 0 : index
    %3 = vector.load %arg3[%c0, %c0_1] : memref<16x32xf32, #tpu.memory_space<vmem>>, vector<16x32xf32>
    %4 = arith.truncf %3 : vector<16x32xf32> to vector<16x32xbf16>
    %c0_2 = arith.constant 0 : index
    %c0_3 = arith.constant 0 : index
    %5 = vector.load %arg7[%c0_2, %c0_3] : memref<16x32xf32, #tpu.memory_space<vmem>>, vector<16x32xf32>
    %c0_4 = arith.constant 0 : index
    %c0_5 = arith.constant 0 : index
    %6 = vector.load %arg4[%c0_4, %c0_5] : memref<32x32xbf16, #tpu.memory_space<vmem>>, vector<32x32xbf16>
    %cst = arith.constant dense<0.000000e+00> : vector<16x32xf32>
    %7 = tpu.matmul %4, %6, %cst {dimension_numbers = #tpu.dot_dimension_numbers<[1], [0], [0], [1], [0, 0, 1, 1], [], []>} : vector<16x32xbf16>, vector<32x32xbf16>, vector<16x32xf32> -> vector<16x32xf32>
    %8 = arith.addf %5, %7 : vector<16x32xf32>
    %c0_6 = arith.constant 0 : index
    %c0_7 = arith.constant 0 : index
    %9 = vector.load %arg7[%c0_6, %c0_7] : memref<16x32xf32, #tpu.memory_space<vmem>>, vector<16x32xf32>
    tpu.vector_store %arg7[%c0_6, %c0_7], %8 {strides = array<i32>} : memref<16x32xf32, #tpu.memory_space<vmem>>, vector<16x32xf32>,
    %c0_i32_8 = arith.constant 0 : i32
    %10 = arith.cmpi eq, %arg2, %c0_i32_8 : i32
    %11 = arith.extui %10 : i1 to i32
    %c0_i32_9 = arith.constant 0 : i32
    %12 = arith.cmpi ne, %11, %c0_i32_9 : i32
    scf.if %12 {
      %c0_10 = arith.constant 0 : index
      %c0_11 = arith.constant 0 : index
      %13 = vector.load %arg7[%c0_10, %c0_11] : memref<16x32xf32, #tpu.memory_space<vmem>>, vector<16x32xf32>
      %c0_12 = arith.constant 0 : index
      %c0_13 = arith.constant 0 : index
      %14 = vector.load %arg5[%c0_12, %c0_13] : memref<1x32xf32, #tpu.memory_space<vmem>>, vector<1x32xf32>
      %15 = vector.broadcast %14 : vector<1x32xf32> to vector<16x32xf32>
      %16 = arith.addf %13, %15 : vector<16x32xf32>
      %17 = arith.truncf %16 : vector<16x32xf32> to vector<16x32xbf16>
      %c0_14 = arith.constant 0 : index
      %c0_15 = arith.constant 0 : index
      %18 = vector.load %arg6[%c0_14, %c0_15] : memref<16x32xbf16, #tpu.memory_space<vmem>>, vector<16x32xbf16>
      tpu.vector_store %arg6[%c0_14, %c0_15], %17 {strides = array<i32>} : memref<16x32xbf16, #tpu.memory_space<vmem>>, vector<16x32xbf16>,
    } else {
    }
    return
  }
  func.func @transform_0(%arg0: i32, %arg1: i32, %arg2: i32) -> (i32, i32) {
    %c0_i32 = arith.constant 0 : i32
    return %arg0, %arg2 : i32, i32
  }
  func.func @transform_1(%arg0: i32, %arg1: i32, %arg2: i32) -> (i32, i32) {
    %c0_i32 = arith.constant 0 : i32
    return %arg2, %arg1 : i32, i32
  }
  func.func @transform_2(%arg0: i32, %arg1: i32, %arg2: i32) -> (i32, i32) {
    %c0_i32 = arith.constant 0 : i32
    %c0_i32_0 = arith.constant 0 : i32
    return %c0_i32, %arg1 : i32, i32
  }
  func.func @transform_3(%arg0: i32, %arg1: i32, %arg2: i32) -> (i32, i32) {
    %c0_i32 = arith.constant 0 : i32
    return %arg0, %arg1 : i32, i32
  }
}

module attributes {stable_mosaic.version = 11 : i64} {
  func.func @_attn_kernel(%arg0: i32, %arg1: i32, %arg2: i32, %arg3: memref<1x8x32xbf16, #tpu.memory_space<vmem>>, %arg4: memref<1x8x32xbf16, #tpu.memory_space<vmem>>, %arg5: memref<1x8x32xbf16, #tpu.memory_space<vmem>>, %arg6: memref<1x8x8xi32, #tpu.memory_space<vmem>>, %arg7: memref<1x8x32xbf16, #tpu.memory_space<vmem>>, %arg8: memref<4x8x1xf32, #tpu.memory_space<vmem>>, %arg9: memref<4x8x1xf32, #tpu.memory_space<vmem>>, %arg10: memref<8x32xf32, #tpu.memory_space<vmem>>) attributes {dimension_semantics = [#tpu.dimension_semantics<parallel>, #tpu.dimension_semantics<parallel>, #tpu.dimension_semantics<arbitrary>], iteration_bounds = array<i64: 2, 1, 1>, scalar_prefetch = 0 : i64, scratch_operands = 3 : i64, tpu.core_type = #tpu.core_type<tc>, window_params = [{transform_indices = @transform_0, window_bounds = array<i64: 1, 8, 32>}, {transform_indices = @transform_1, window_bounds = array<i64: 1, 8, 32>}, {transform_indices = @transform_2, window_bounds = array<i64: 1, 8, 32>}, {transform_indices = @transform_3, window_bounds = array<i64: 1, 8, 8>}, {transform_indices = @transform_4, window_bounds = array<i64: 1, 8, 32>}]} {
    %c0_i32 = arith.constant 0 : i32
    %0 = arith.cmpi eq, %arg2, %c0_i32 : i32
    %1 = arith.extui %0 : i1 to i32
    %c0_i32_0 = arith.constant 0 : i32
    %2 = arith.cmpi ne, %1, %c0_i32_0 : i32
    scf.if %2 {
      %cst_90 = arith.constant 0xFF800000 : f32
      %154 = vector.broadcast %cst_90 : f32 to vector<4x8x1xf32>
      %c0_91 = arith.constant 0 : index
      %c0_92 = arith.constant 0 : index
      %c0_93 = arith.constant 0 : index
      %155 = vector.load %arg8[%c0_91, %c0_92, %c0_93] : memref<4x8x1xf32, #tpu.memory_space<vmem>>, vector<4x8x1xf32>
      tpu.vector_store %arg8[%c0_91, %c0_92, %c0_93], %154 {strides = array<i32>} : memref<4x8x1xf32, #tpu.memory_space<vmem>>, vector<4x8x1xf32>,
      %cst_94 = arith.constant 0.000000e+00 : f32
      %156 = vector.broadcast %cst_94 : f32 to vector<4x8x1xf32>
      %c0_95 = arith.constant 0 : index
      %c0_96 = arith.constant 0 : index
      %c0_97 = arith.constant 0 : index
      %157 = vector.load %arg9[%c0_95, %c0_96, %c0_97] : memref<4x8x1xf32, #tpu.memory_space<vmem>>, vector<4x8x1xf32>
      tpu.vector_store %arg9[%c0_95, %c0_96, %c0_97], %156 {strides = array<i32>} : memref<4x8x1xf32, #tpu.memory_space<vmem>>, vector<4x8x1xf32>,
      %cst_98 = arith.constant 0.000000e+00 : f32
      %158 = vector.broadcast %cst_98 : f32 to vector<8x32xf32>
      %c0_99 = arith.constant 0 : index
      %c0_100 = arith.constant 0 : index
      %159 = vector.load %arg10[%c0_99, %c0_100] : memref<8x32xf32, #tpu.memory_space<vmem>>, vector<8x32xf32>
      tpu.vector_store %arg10[%c0_99, %c0_100], %158 {strides = array<i32>} : memref<8x32xf32, #tpu.memory_space<vmem>>, vector<8x32xf32>,
    } else {
    }
    %c0 = arith.constant 0 : index
    %c0_1 = arith.constant 0 : index
    %c0_2 = arith.constant 0 : index
    %3 = vector.load %arg3[%c0, %c0_1, %c0_2] : memref<1x8x32xbf16, #tpu.memory_space<vmem>>, vector<1x8x32xbf16>
    %4 = vector.shape_cast %3 : vector<1x8x32xbf16> to vector<8x32xbf16>
    %c0_3 = arith.constant 0 : index
    %c0_4 = arith.constant 0 : index
    %c0_5 = arith.constant 0 : index
    %5 = vector.load %arg4[%c0_3, %c0_4, %c0_5] : memref<1x8x32xbf16, #tpu.memory_space<vmem>>, vector<1x8x32xbf16>
    %6 = vector.shape_cast %5 : vector<1x8x32xbf16> to vector<8x32xbf16>
    %c0_6 = arith.constant 0 : index
    %c0_7 = arith.constant 0 : index
    %c0_8 = arith.constant 0 : index
    %7 = vector.load %arg5[%c0_6, %c0_7, %c0_8] : memref<1x8x32xbf16, #tpu.memory_space<vmem>>, vector<1x8x32xbf16>
    %8 = vector.shape_cast %7 : vector<1x8x32xbf16> to vector<8x32xbf16>
    %c0_9 = arith.constant 0 : index
    %c0_10 = arith.constant 0 : index
    %c0_11 = arith.constant 0 : index
    %9 = vector.load %arg6[%c0_9, %c0_10, %c0_11] : memref<1x8x8xi32, #tpu.memory_space<vmem>>, vector<1x8x8xi32>
    %10 = vector.shape_cast %9 : vector<1x8x8xi32> to vector<8x8xi32>
    %cst = arith.constant dense<0> : vector<8x8xi32>
    %11 = arith.cmpi ne, %10, %cst : vector<8x8xi32>
    %cst_12 = arith.constant -1.000000e+04 : f32
    %cst_13 = arith.constant 0.000000e+00 : f32
    %12 = vector.broadcast %cst_12 : f32 to vector<8x8xf32>
    %13 = vector.broadcast %cst_13 : f32 to vector<8x8xf32>
    %14 = arith.select %11, %12, %13 : vector<8x8xi1>, vector<8x8xf32>
    %15 = vector.extract_strided_slice %4 {offsets = [0, 0], sizes = [8, 8], strides = [1, 1]} : vector<8x32xbf16> to vector<8x8xbf16>
    %16 = vector.extract_strided_slice %6 {offsets = [0, 0], sizes = [8, 8], strides = [1, 1]} : vector<8x32xbf16> to vector<8x8xbf16>
    %17 = vector.extract_strided_slice %8 {offsets = [0, 0], sizes = [8, 8], strides = [1, 1]} : vector<8x32xbf16> to vector<8x8xbf16>
    %cst_14 = arith.constant dense<0.000000e+00> : vector<8x8xf32>
    %18 = tpu.matmul %15, %16, %cst_14 {dimension_numbers = #tpu.dot_dimension_numbers<[1], [1], [0], [0], [0, 0, 1, 0], [], []>} : vector<8x8xbf16>, vector<8x8xbf16>, vector<8x8xf32> -> vector<8x8xf32>
    %19 = arith.addf %18, %14 : vector<8x8xf32>
    %c0_15 = arith.constant 0 : index
    %c0_16 = arith.constant 0 : index
    %c0_17 = arith.constant 0 : index
    %20 = vector.load %arg8[%c0_15, %c0_16, %c0_17] : memref<4x8x1xf32, #tpu.memory_space<vmem>>, vector<1x8x1xf32>
    %21 = vector.shape_cast %20 : vector<1x8x1xf32> to vector<8x1xf32>
    %cst_18 = arith.constant dense<0xFF800000> : vector<8xf32>
    %22 = vector.multi_reduction <maximumf>, %19, %cst_18 [1] : vector<8x8xf32> to vector<8xf32>
    %23 = vector.shape_cast %22 : vector<8xf32> to vector<8x1xf32>
    %24 = arith.maximumf %21, %23 : vector<8x1xf32>
    %25 = arith.subf %21, %24 : vector<8x1xf32>
    %26 = math.exp %25 : vector<8x1xf32>
    %27 = vector.broadcast %24 : vector<8x1xf32> to vector<8x8xf32>
    %28 = arith.subf %19, %27 : vector<8x8xf32>
    %29 = math.exp %28 : vector<8x8xf32>
    %c0_19 = arith.constant 0 : index
    %c0_20 = arith.constant 0 : index
    %c0_21 = arith.constant 0 : index
    %30 = vector.load %arg9[%c0_19, %c0_20, %c0_21] : memref<4x8x1xf32, #tpu.memory_space<vmem>>, vector<1x8x1xf32>
    %31 = vector.shape_cast %30 : vector<1x8x1xf32> to vector<8x1xf32>
    %32 = arith.mulf %26, %31 : vector<8x1xf32>
    %cst_22 = arith.constant dense<0.000000e+00> : vector<8xf32>
    %33 = vector.multi_reduction <add>, %29, %cst_22 [1] : vector<8x8xf32> to vector<8xf32>
    %34 = vector.shape_cast %33 : vector<8xf32> to vector<8x1xf32>
    %35 = arith.addf %32, %34 : vector<8x1xf32>
    %c0_23 = arith.constant 0 : index
    %c0_24 = arith.constant 0 : index
    %c0_25 = arith.constant 0 : index
    %36 = vector.load %arg9[%c0_23, %c0_24, %c0_25] : memref<4x8x1xf32, #tpu.memory_space<vmem>>, vector<1x8x1xf32>
    %37 = vector.shape_cast %36 : vector<1x8x1xf32> to vector<8x1xf32>
    %38 = vector.shape_cast %35 : vector<8x1xf32> to vector<1x8x1xf32>
    tpu.vector_store %arg9[%c0_23, %c0_24, %c0_25], %38 {strides = array<i32>} : memref<4x8x1xf32, #tpu.memory_space<vmem>>, vector<1x8x1xf32>,
    %c0_26 = arith.constant 0 : index
    %c0_27 = arith.constant 0 : index
    %39 = vector.load %arg10[%c0_26, %c0_27] : memref<8x32xf32, #tpu.memory_space<vmem>>, vector<8x8xf32>
    %40 = vector.broadcast %26 : vector<8x1xf32> to vector<8x8xf32>
    %41 = arith.mulf %40, %39 : vector<8x8xf32>
    %42 = arith.truncf %29 : vector<8x8xf32> to vector<8x8xbf16>
    %cst_28 = arith.constant dense<0.000000e+00> : vector<8x8xf32>
    %43 = tpu.matmul %42, %17, %cst_28 {dimension_numbers = #tpu.dot_dimension_numbers<[1], [0], [0], [1], [0, 0, 1, 1], [], []>} : vector<8x8xbf16>, vector<8x8xbf16>, vector<8x8xf32> -> vector<8x8xf32>
    %44 = arith.addf %41, %43 : vector<8x8xf32>
    %c0_29 = arith.constant 0 : index
    %c0_30 = arith.constant 0 : index
    %45 = vector.load %arg10[%c0_29, %c0_30] : memref<8x32xf32, #tpu.memory_space<vmem>>, vector<8x8xf32>
    tpu.vector_store %arg10[%c0_29, %c0_30], %44 {strides = array<i32>} : memref<8x32xf32, #tpu.memory_space<vmem>>, vector<8x8xf32>,
    %c0_31 = arith.constant 0 : index
    %c0_32 = arith.constant 0 : index
    %c0_33 = arith.constant 0 : index
    %46 = vector.load %arg8[%c0_31, %c0_32, %c0_33] : memref<4x8x1xf32, #tpu.memory_space<vmem>>, vector<1x8x1xf32>
    %47 = vector.shape_cast %46 : vector<1x8x1xf32> to vector<8x1xf32>
    %48 = vector.shape_cast %24 : vector<8x1xf32> to vector<1x8x1xf32>
    tpu.vector_store %arg8[%c0_31, %c0_32, %c0_33], %48 {strides = array<i32>} : memref<4x8x1xf32, #tpu.memory_space<vmem>>, vector<1x8x1xf32>,
    %49 = vector.extract_strided_slice %4 {offsets = [0, 8], sizes = [8, 8], strides = [1, 1]} : vector<8x32xbf16> to vector<8x8xbf16>
    %50 = vector.extract_strided_slice %6 {offsets = [0, 8], sizes = [8, 8], strides = [1, 1]} : vector<8x32xbf16> to vector<8x8xbf16>
    %51 = vector.extract_strided_slice %8 {offsets = [0, 8], sizes = [8, 8], strides = [1, 1]} : vector<8x32xbf16> to vector<8x8xbf16>
    %cst_34 = arith.constant dense<0.000000e+00> : vector<8x8xf32>
    %52 = tpu.matmul %49, %50, %cst_34 {dimension_numbers = #tpu.dot_dimension_numbers<[1], [1], [0], [0], [0, 0, 1, 0], [], []>} : vector<8x8xbf16>, vector<8x8xbf16>, vector<8x8xf32> -> vector<8x8xf32>
    %53 = arith.addf %52, %14 : vector<8x8xf32>
    %c1 = arith.constant 1 : index
    %c0_35 = arith.constant 0 : index
    %c0_36 = arith.constant 0 : index
    %54 = vector.load %arg8[%c1, %c0_35, %c0_36] : memref<4x8x1xf32, #tpu.memory_space<vmem>>, vector<1x8x1xf32>
    %55 = vector.shape_cast %54 : vector<1x8x1xf32> to vector<8x1xf32>
    %cst_37 = arith.constant dense<0xFF800000> : vector<8xf32>
    %56 = vector.multi_reduction <maximumf>, %53, %cst_37 [1] : vector<8x8xf32> to vector<8xf32>
    %57 = vector.shape_cast %56 : vector<8xf32> to vector<8x1xf32>
    %58 = arith.maximumf %55, %57 : vector<8x1xf32>
    %59 = arith.subf %55, %58 : vector<8x1xf32>
    %60 = math.exp %59 : vector<8x1xf32>
    %61 = vector.broadcast %58 : vector<8x1xf32> to vector<8x8xf32>
    %62 = arith.subf %53, %61 : vector<8x8xf32>
    %63 = math.exp %62 : vector<8x8xf32>
    %c1_38 = arith.constant 1 : index
    %c0_39 = arith.constant 0 : index
    %c0_40 = arith.constant 0 : index
    %64 = vector.load %arg9[%c1_38, %c0_39, %c0_40] : memref<4x8x1xf32, #tpu.memory_space<vmem>>, vector<1x8x1xf32>
    %65 = vector.shape_cast %64 : vector<1x8x1xf32> to vector<8x1xf32>
    %66 = arith.mulf %60, %65 : vector<8x1xf32>
    %cst_41 = arith.constant dense<0.000000e+00> : vector<8xf32>
    %67 = vector.multi_reduction <add>, %63, %cst_41 [1] : vector<8x8xf32> to vector<8xf32>
    %68 = vector.shape_cast %67 : vector<8xf32> to vector<8x1xf32>
    %69 = arith.addf %66, %68 : vector<8x1xf32>
    %c1_42 = arith.constant 1 : index
    %c0_43 = arith.constant 0 : index
    %c0_44 = arith.constant 0 : index
    %70 = vector.load %arg9[%c1_42, %c0_43, %c0_44] : memref<4x8x1xf32, #tpu.memory_space<vmem>>, vector<1x8x1xf32>
    %71 = vector.shape_cast %70 : vector<1x8x1xf32> to vector<8x1xf32>
    %72 = vector.shape_cast %69 : vector<8x1xf32> to vector<1x8x1xf32>
    tpu.vector_store %arg9[%c1_42, %c0_43, %c0_44], %72 {strides = array<i32>} : memref<4x8x1xf32, #tpu.memory_space<vmem>>, vector<1x8x1xf32>,
    %c0_45 = arith.constant 0 : index
    %c8 = arith.constant 8 : index
    %73 = vector.load %arg10[%c0_45, %c8] : memref<8x32xf32, #tpu.memory_space<vmem>>, vector<8x8xf32>
    %74 = vector.broadcast %60 : vector<8x1xf32> to vector<8x8xf32>
    %75 = arith.mulf %74, %73 : vector<8x8xf32>
    %76 = arith.truncf %63 : vector<8x8xf32> to vector<8x8xbf16>
    %cst_46 = arith.constant dense<0.000000e+00> : vector<8x8xf32>
    %77 = tpu.matmul %76, %51, %cst_46 {dimension_numbers = #tpu.dot_dimension_numbers<[1], [0], [0], [1], [0, 0, 1, 1], [], []>} : vector<8x8xbf16>, vector<8x8xbf16>, vector<8x8xf32> -> vector<8x8xf32>
    %78 = arith.addf %75, %77 : vector<8x8xf32>
    %c0_47 = arith.constant 0 : index
    %c8_48 = arith.constant 8 : index
    %79 = vector.load %arg10[%c0_47, %c8_48] : memref<8x32xf32, #tpu.memory_space<vmem>>, vector<8x8xf32>
    tpu.vector_store %arg10[%c0_47, %c8_48], %78 {strides = array<i32>} : memref<8x32xf32, #tpu.memory_space<vmem>>, vector<8x8xf32>,
    %c1_49 = arith.constant 1 : index
    %c0_50 = arith.constant 0 : index
    %c0_51 = arith.constant 0 : index
    %80 = vector.load %arg8[%c1_49, %c0_50, %c0_51] : memref<4x8x1xf32, #tpu.memory_space<vmem>>, vector<1x8x1xf32>
    %81 = vector.shape_cast %80 : vector<1x8x1xf32> to vector<8x1xf32>
    %82 = vector.shape_cast %58 : vector<8x1xf32> to vector<1x8x1xf32>
    tpu.vector_store %arg8[%c1_49, %c0_50, %c0_51], %82 {strides = array<i32>} : memref<4x8x1xf32, #tpu.memory_space<vmem>>, vector<1x8x1xf32>,
    %83 = vector.extract_strided_slice %4 {offsets = [0, 16], sizes = [8, 8], strides = [1, 1]} : vector<8x32xbf16> to vector<8x8xbf16>
    %84 = vector.extract_strided_slice %6 {offsets = [0, 16], sizes = [8, 8], strides = [1, 1]} : vector<8x32xbf16> to vector<8x8xbf16>
    %85 = vector.extract_strided_slice %8 {offsets = [0, 16], sizes = [8, 8], strides = [1, 1]} : vector<8x32xbf16> to vector<8x8xbf16>
    %cst_52 = arith.constant dense<0.000000e+00> : vector<8x8xf32>
    %86 = tpu.matmul %83, %84, %cst_52 {dimension_numbers = #tpu.dot_dimension_numbers<[1], [1], [0], [0], [0, 0, 1, 0], [], []>} : vector<8x8xbf16>, vector<8x8xbf16>, vector<8x8xf32> -> vector<8x8xf32>
    %87 = arith.addf %86, %14 : vector<8x8xf32>
    %c2 = arith.constant 2 : index
    %c0_53 = arith.constant 0 : index
    %c0_54 = arith.constant 0 : index
    %88 = vector.load %arg8[%c2, %c0_53, %c0_54] : memref<4x8x1xf32, #tpu.memory_space<vmem>>, vector<1x8x1xf32>
    %89 = vector.shape_cast %88 : vector<1x8x1xf32> to vector<8x1xf32>
    %cst_55 = arith.constant dense<0xFF800000> : vector<8xf32>
    %90 = vector.multi_reduction <maximumf>, %87, %cst_55 [1] : vector<8x8xf32> to vector<8xf32>
    %91 = vector.shape_cast %90 : vector<8xf32> to vector<8x1xf32>
    %92 = arith.maximumf %89, %91 : vector<8x1xf32>
    %93 = arith.subf %89, %92 : vector<8x1xf32>
    %94 = math.exp %93 : vector<8x1xf32>
    %95 = vector.broadcast %92 : vector<8x1xf32> to vector<8x8xf32>
    %96 = arith.subf %87, %95 : vector<8x8xf32>
    %97 = math.exp %96 : vector<8x8xf32>
    %c2_56 = arith.constant 2 : index
    %c0_57 = arith.constant 0 : index
    %c0_58 = arith.constant 0 : index
    %98 = vector.load %arg9[%c2_56, %c0_57, %c0_58] : memref<4x8x1xf32, #tpu.memory_space<vmem>>, vector<1x8x1xf32>
    %99 = vector.shape_cast %98 : vector<1x8x1xf32> to vector<8x1xf32>
    %100 = arith.mulf %94, %99 : vector<8x1xf32>
    %cst_59 = arith.constant dense<0.000000e+00> : vector<8xf32>
    %101 = vector.multi_reduction <add>, %97, %cst_59 [1] : vector<8x8xf32> to vector<8xf32>
    %102 = vector.shape_cast %101 : vector<8xf32> to vector<8x1xf32>
    %103 = arith.addf %100, %102 : vector<8x1xf32>
    %c2_60 = arith.constant 2 : index
    %c0_61 = arith.constant 0 : index
    %c0_62 = arith.constant 0 : index
    %104 = vector.load %arg9[%c2_60, %c0_61, %c0_62] : memref<4x8x1xf32, #tpu.memory_space<vmem>>, vector<1x8x1xf32>
    %105 = vector.shape_cast %104 : vector<1x8x1xf32> to vector<8x1xf32>
    %106 = vector.shape_cast %103 : vector<8x1xf32> to vector<1x8x1xf32>
    tpu.vector_store %arg9[%c2_60, %c0_61, %c0_62], %106 {strides = array<i32>} : memref<4x8x1xf32, #tpu.memory_space<vmem>>, vector<1x8x1xf32>,
    %c0_63 = arith.constant 0 : index
    %c16 = arith.constant 16 : index
    %107 = vector.load %arg10[%c0_63, %c16] : memref<8x32xf32, #tpu.memory_space<vmem>>, vector<8x8xf32>
    %108 = vector.broadcast %94 : vector<8x1xf32> to vector<8x8xf32>
    %109 = arith.mulf %108, %107 : vector<8x8xf32>
    %110 = arith.truncf %97 : vector<8x8xf32> to vector<8x8xbf16>
    %cst_64 = arith.constant dense<0.000000e+00> : vector<8x8xf32>
    %111 = tpu.matmul %110, %85, %cst_64 {dimension_numbers = #tpu.dot_dimension_numbers<[1], [0], [0], [1], [0, 0, 1, 1], [], []>} : vector<8x8xbf16>, vector<8x8xbf16>, vector<8x8xf32> -> vector<8x8xf32>
    %112 = arith.addf %109, %111 : vector<8x8xf32>
    %c0_65 = arith.constant 0 : index
    %c16_66 = arith.constant 16 : index
    %113 = vector.load %arg10[%c0_65, %c16_66] : memref<8x32xf32, #tpu.memory_space<vmem>>, vector<8x8xf32>
    tpu.vector_store %arg10[%c0_65, %c16_66], %112 {strides = array<i32>} : memref<8x32xf32, #tpu.memory_space<vmem>>, vector<8x8xf32>,
    %c2_67 = arith.constant 2 : index
    %c0_68 = arith.constant 0 : index
    %c0_69 = arith.constant 0 : index
    %114 = vector.load %arg8[%c2_67, %c0_68, %c0_69] : memref<4x8x1xf32, #tpu.memory_space<vmem>>, vector<1x8x1xf32>
    %115 = vector.shape_cast %114 : vector<1x8x1xf32> to vector<8x1xf32>
    %116 = vector.shape_cast %92 : vector<8x1xf32> to vector<1x8x1xf32>
    tpu.vector_store %arg8[%c2_67, %c0_68, %c0_69], %116 {strides = array<i32>} : memref<4x8x1xf32, #tpu.memory_space<vmem>>, vector<1x8x1xf32>,
    %117 = vector.extract_strided_slice %4 {offsets = [0, 24], sizes = [8, 8], strides = [1, 1]} : vector<8x32xbf16> to vector<8x8xbf16>
    %118 = vector.extract_strided_slice %6 {offsets = [0, 24], sizes = [8, 8], strides = [1, 1]} : vector<8x32xbf16> to vector<8x8xbf16>
    %119 = vector.extract_strided_slice %8 {offsets = [0, 24], sizes = [8, 8], strides = [1, 1]} : vector<8x32xbf16> to vector<8x8xbf16>
    %cst_70 = arith.constant dense<0.000000e+00> : vector<8x8xf32>
    %120 = tpu.matmul %117, %118, %cst_70 {dimension_numbers = #tpu.dot_dimension_numbers<[1], [1], [0], [0], [0, 0, 1, 0], [], []>} : vector<8x8xbf16>, vector<8x8xbf16>, vector<8x8xf32> -> vector<8x8xf32>
    %121 = arith.addf %120, %14 : vector<8x8xf32>
    %c3 = arith.constant 3 : index
    %c0_71 = arith.constant 0 : index
    %c0_72 = arith.constant 0 : index
    %122 = vector.load %arg8[%c3, %c0_71, %c0_72] : memref<4x8x1xf32, #tpu.memory_space<vmem>>, vector<1x8x1xf32>
    %123 = vector.shape_cast %122 : vector<1x8x1xf32> to vector<8x1xf32>
    %cst_73 = arith.constant dense<0xFF800000> : vector<8xf32>
    %124 = vector.multi_reduction <maximumf>, %121, %cst_73 [1] : vector<8x8xf32> to vector<8xf32>
    %125 = vector.shape_cast %124 : vector<8xf32> to vector<8x1xf32>
    %126 = arith.maximumf %123, %125 : vector<8x1xf32>
    %127 = arith.subf %123, %126 : vector<8x1xf32>
    %128 = math.exp %127 : vector<8x1xf32>
    %129 = vector.broadcast %126 : vector<8x1xf32> to vector<8x8xf32>
    %130 = arith.subf %121, %129 : vector<8x8xf32>
    %131 = math.exp %130 : vector<8x8xf32>
    %c3_74 = arith.constant 3 : index
    %c0_75 = arith.constant 0 : index
    %c0_76 = arith.constant 0 : index
    %132 = vector.load %arg9[%c3_74, %c0_75, %c0_76] : memref<4x8x1xf32, #tpu.memory_space<vmem>>, vector<1x8x1xf32>
    %133 = vector.shape_cast %132 : vector<1x8x1xf32> to vector<8x1xf32>
    %134 = arith.mulf %128, %133 : vector<8x1xf32>
    %cst_77 = arith.constant dense<0.000000e+00> : vector<8xf32>
    %135 = vector.multi_reduction <add>, %131, %cst_77 [1] : vector<8x8xf32> to vector<8xf32>
    %136 = vector.shape_cast %135 : vector<8xf32> to vector<8x1xf32>
    %137 = arith.addf %134, %136 : vector<8x1xf32>
    %c3_78 = arith.constant 3 : index
    %c0_79 = arith.constant 0 : index
    %c0_80 = arith.constant 0 : index
    %138 = vector.load %arg9[%c3_78, %c0_79, %c0_80] : memref<4x8x1xf32, #tpu.memory_space<vmem>>, vector<1x8x1xf32>
    %139 = vector.shape_cast %138 : vector<1x8x1xf32> to vector<8x1xf32>
    %140 = vector.shape_cast %137 : vector<8x1xf32> to vector<1x8x1xf32>
    tpu.vector_store %arg9[%c3_78, %c0_79, %c0_80], %140 {strides = array<i32>} : memref<4x8x1xf32, #tpu.memory_space<vmem>>, vector<1x8x1xf32>,
    %c0_81 = arith.constant 0 : index
    %c24 = arith.constant 24 : index
    %141 = vector.load %arg10[%c0_81, %c24] : memref<8x32xf32, #tpu.memory_space<vmem>>, vector<8x8xf32>
    %142 = vector.broadcast %128 : vector<8x1xf32> to vector<8x8xf32>
    %143 = arith.mulf %142, %141 : vector<8x8xf32>
    %144 = arith.truncf %131 : vector<8x8xf32> to vector<8x8xbf16>
    %cst_82 = arith.constant dense<0.000000e+00> : vector<8x8xf32>
    %145 = tpu.matmul %144, %119, %cst_82 {dimension_numbers = #tpu.dot_dimension_numbers<[1], [0], [0], [1], [0, 0, 1, 1], [], []>} : vector<8x8xbf16>, vector<8x8xbf16>, vector<8x8xf32> -> vector<8x8xf32>
    %146 = arith.addf %143, %145 : vector<8x8xf32>
    %c0_83 = arith.constant 0 : index
    %c24_84 = arith.constant 24 : index
    %147 = vector.load %arg10[%c0_83, %c24_84] : memref<8x32xf32, #tpu.memory_space<vmem>>, vector<8x8xf32>
    tpu.vector_store %arg10[%c0_83, %c24_84], %146 {strides = array<i32>} : memref<8x32xf32, #tpu.memory_space<vmem>>, vector<8x8xf32>,
    %c3_85 = arith.constant 3 : index
    %c0_86 = arith.constant 0 : index
    %c0_87 = arith.constant 0 : index
    %148 = vector.load %arg8[%c3_85, %c0_86, %c0_87] : memref<4x8x1xf32, #tpu.memory_space<vmem>>, vector<1x8x1xf32>
    %149 = vector.shape_cast %148 : vector<1x8x1xf32> to vector<8x1xf32>
    %150 = vector.shape_cast %126 : vector<8x1xf32> to vector<1x8x1xf32>
    tpu.vector_store %arg8[%c3_85, %c0_86, %c0_87], %150 {strides = array<i32>} : memref<4x8x1xf32, #tpu.memory_space<vmem>>, vector<1x8x1xf32>,
    %c0_i32_88 = arith.constant 0 : i32
    %151 = arith.cmpi eq, %arg2, %c0_i32_88 : i32
    %152 = arith.extui %151 : i1 to i32
    %c0_i32_89 = arith.constant 0 : i32
    %153 = arith.cmpi ne, %152, %c0_i32_89 : i32
    scf.if %153 {
      %c0_90 = arith.constant 0 : index
      %c0_91 = arith.constant 0 : index
      %c0_92 = arith.constant 0 : index
      %154 = vector.load %arg9[%c0_90, %c0_91, %c0_92] : memref<4x8x1xf32, #tpu.memory_space<vmem>>, vector<1x8x1xf32>
      %155 = vector.shape_cast %154 : vector<1x8x1xf32> to vector<8x1xf32>
      %156 = tpu.reciprocal %155 {approx = true} : vector<8x1xf32> -> vector<8x1xf32>
      %c0_93 = arith.constant 0 : index
      %c0_94 = arith.constant 0 : index
      %157 = vector.load %arg10[%c0_93, %c0_94] : memref<8x32xf32, #tpu.memory_space<vmem>>, vector<8x8xf32>
      %158 = vector.broadcast %156 : vector<8x1xf32> to vector<8x8xf32>
      %159 = arith.mulf %157, %158 : vector<8x8xf32>
      %c1_95 = arith.constant 1 : index
      %c0_96 = arith.constant 0 : index
      %c0_97 = arith.constant 0 : index
      %160 = vector.load %arg9[%c1_95, %c0_96, %c0_97] : memref<4x8x1xf32, #tpu.memory_space<vmem>>, vector<1x8x1xf32>
      %161 = vector.shape_cast %160 : vector<1x8x1xf32> to vector<8x1xf32>
      %162 = tpu.reciprocal %161 {approx = true} : vector<8x1xf32> -> vector<8x1xf32>
      %c0_98 = arith.constant 0 : index
      %c8_99 = arith.constant 8 : index
      %163 = vector.load %arg10[%c0_98, %c8_99] : memref<8x32xf32, #tpu.memory_space<vmem>>, vector<8x8xf32>
      %164 = vector.broadcast %162 : vector<8x1xf32> to vector<8x8xf32>
      %165 = arith.mulf %163, %164 : vector<8x8xf32>
      %c2_100 = arith.constant 2 : index
      %c0_101 = arith.constant 0 : index
      %c0_102 = arith.constant 0 : index
      %166 = vector.load %arg9[%c2_100, %c0_101, %c0_102] : memref<4x8x1xf32, #tpu.memory_space<vmem>>, vector<1x8x1xf32>
      %167 = vector.shape_cast %166 : vector<1x8x1xf32> to vector<8x1xf32>
      %168 = tpu.reciprocal %167 {approx = true} : vector<8x1xf32> -> vector<8x1xf32>
      %c0_103 = arith.constant 0 : index
      %c16_104 = arith.constant 16 : index
      %169 = vector.load %arg10[%c0_103, %c16_104] : memref<8x32xf32, #tpu.memory_space<vmem>>, vector<8x8xf32>
      %170 = vector.broadcast %168 : vector<8x1xf32> to vector<8x8xf32>
      %171 = arith.mulf %169, %170 : vector<8x8xf32>
      %c3_105 = arith.constant 3 : index
      %c0_106 = arith.constant 0 : index
      %c0_107 = arith.constant 0 : index
      %172 = vector.load %arg9[%c3_105, %c0_106, %c0_107] : memref<4x8x1xf32, #tpu.memory_space<vmem>>, vector<1x8x1xf32>
      %173 = vector.shape_cast %172 : vector<1x8x1xf32> to vector<8x1xf32>
      %174 = tpu.reciprocal %173 {approx = true} : vector<8x1xf32> -> vector<8x1xf32>
      %c0_108 = arith.constant 0 : index
      %c24_109 = arith.constant 24 : index
      %175 = vector.load %arg10[%c0_108, %c24_109] : memref<8x32xf32, #tpu.memory_space<vmem>>, vector<8x8xf32>
      %176 = vector.broadcast %174 : vector<8x1xf32> to vector<8x8xf32>
      %177 = arith.mulf %175, %176 : vector<8x8xf32>
      %178 = tpu.concatenate %159, %165, %171, %177 in 1 : vector<8x8xf32>, vector<8x8xf32>, vector<8x8xf32>, vector<8x8xf32> -> vector<8x32xf32>
      %179 = arith.truncf %178 : vector<8x32xf32> to vector<8x32xbf16>
      %c0_110 = arith.constant 0 : index
      %c0_111 = arith.constant 0 : index
      %c0_112 = arith.constant 0 : index
      %180 = vector.load %arg7[%c0_110, %c0_111, %c0_112] : memref<1x8x32xbf16, #tpu.memory_space<vmem>>, vector<1x8x32xbf16>
      %181 = vector.shape_cast %180 : vector<1x8x32xbf16> to vector<8x32xbf16>
      %182 = vector.shape_cast %179 : vector<8x32xbf16> to vector<1x8x32xbf16>
      tpu.vector_store %arg7[%c0_110, %c0_111, %c0_112], %182 {strides = array<i32>} : memref<1x8x32xbf16, #tpu.memory_space<vmem>>, vector<1x8x32xbf16>,
    } else {
    }
    return
  }
  func.func @transform_0(%arg0: i32, %arg1: i32, %arg2: i32) -> (i32, i32, i32) {
    %c0_i32 = arith.constant 0 : i32
    %c0_i32_0 = arith.constant 0 : i32
    return %arg0, %arg1, %c0_i32 : i32, i32, i32
  }
  func.func @transform_1(%arg0: i32, %arg1: i32, %arg2: i32) -> (i32, i32, i32) {
    %c0_i32 = arith.constant 0 : i32
    %c0_i32_0 = arith.constant 0 : i32
    return %arg0, %arg2, %c0_i32 : i32, i32, i32
  }
  func.func @transform_2(%arg0: i32, %arg1: i32, %arg2: i32) -> (i32, i32, i32) {
    %c0_i32 = arith.constant 0 : i32
    %c0_i32_0 = arith.constant 0 : i32
    return %arg0, %arg2, %c0_i32 : i32, i32, i32
  }
  func.func @transform_3(%arg0: i32, %arg1: i32, %arg2: i32) -> (i32, i32, i32) {
    %c0_i32 = arith.constant 0 : i32
    return %arg0, %arg1, %arg2 : i32, i32, i32
  }
  func.func @transform_4(%arg0: i32, %arg1: i32, %arg2: i32) -> (i32, i32, i32) {
    %c0_i32 = arith.constant 0 : i32
    %c0_i32_0 = arith.constant 0 : i32
    return %arg0, %arg1, %c0_i32 : i32, i32, i32
  }
}

module attributes {stable_mosaic.version = 11 : i64} {
  func.func @_linear_kernel(%arg0: i32, %arg1: i32, %arg2: i32, %arg3: memref<16x32xbf16, #tpu.memory_space<vmem>>, %arg4: memref<32x32xbf16, #tpu.memory_space<vmem>>, %arg5: memref<1x32xf32, #tpu.memory_space<vmem>>, %arg6: memref<16x32xf32, #tpu.memory_space<vmem>>, %arg7: memref<16x32xf32, #tpu.memory_space<vmem>>) attributes {dimension_semantics = [#tpu.dimension_semantics<parallel>, #tpu.dimension_semantics<parallel>, #tpu.dimension_semantics<arbitrary>], iteration_bounds = array<i64: 1, 1, 1>, scalar_prefetch = 0 : i64, scratch_operands = 1 : i64, tpu.core_type = #tpu.core_type<tc>, window_params = [{transform_indices = @transform_0, window_bounds = array<i64: 16, 32>}, {transform_indices = @transform_1, window_bounds = array<i64: 32, 32>}, {transform_indices = @transform_2, window_bounds = array<i64: 1, 32>}, {transform_indices = @transform_3, window_bounds = array<i64: 16, 32>}]} {
    %c0_i32 = arith.constant 0 : i32
    %0 = arith.cmpi eq, %arg2, %c0_i32 : i32
    %1 = arith.extui %0 : i1 to i32
    %c0_i32_0 = arith.constant 0 : i32
    %2 = arith.cmpi ne, %1, %c0_i32_0 : i32
    scf.if %2 {
      %cst_10 = arith.constant 0.000000e+00 : f32
      %12 = vector.broadcast %cst_10 : f32 to vector<16x32xf32>
      %c0_11 = arith.constant 0 : index
      %c0_12 = arith.constant 0 : index
      %13 = vector.load %arg7[%c0_11, %c0_12] : memref<16x32xf32, #tpu.memory_space<vmem>>, vector<16x32xf32>
      tpu.vector_store %arg7[%c0_11, %c0_12], %12 {strides = array<i32>} : memref<16x32xf32, #tpu.memory_space<vmem>>, vector<16x32xf32>,
    } else {
    }
    %c0 = arith.constant 0 : index
    %c0_1 = arith.constant 0 : index
    %3 = vector.load %arg3[%c0, %c0_1] : memref<16x32xbf16, #tpu.memory_space<vmem>>, vector<16x32xbf16>
    %c0_2 = arith.constant 0 : index
    %c0_3 = arith.constant 0 : index
    %4 = vector.load %arg7[%c0_2, %c0_3] : memref<16x32xf32, #tpu.memory_space<vmem>>, vector<16x32xf32>
    %c0_4 = arith.constant 0 : index
    %c0_5 = arith.constant 0 : index
    %5 = vector.load %arg4[%c0_4, %c0_5] : memref<32x32xbf16, #tpu.memory_space<vmem>>, vector<32x32xbf16>
    %cst = arith.constant dense<0.000000e+00> : vector<16x32xf32>
    %6 = tpu.matmul %3, %5, %cst {dimension_numbers = #tpu.dot_dimension_numbers<[1], [0], [0], [1], [0, 0, 1, 1], [], []>} : vector<16x32xbf16>, vector<32x32xbf16>, vector<16x32xf32> -> vector<16x32xf32>
    %7 = arith.addf %4, %6 : vector<16x32xf32>
    %c0_6 = arith.constant 0 : index
    %c0_7 = arith.constant 0 : index
    %8 = vector.load %arg7[%c0_6, %c0_7] : memref<16x32xf32, #tpu.memory_space<vmem>>, vector<16x32xf32>
    tpu.vector_store %arg7[%c0_6, %c0_7], %7 {strides = array<i32>} : memref<16x32xf32, #tpu.memory_space<vmem>>, vector<16x32xf32>,
    %c0_i32_8 = arith.constant 0 : i32
    %9 = arith.cmpi eq, %arg2, %c0_i32_8 : i32
    %10 = arith.extui %9 : i1 to i32
    %c0_i32_9 = arith.constant 0 : i32
    %11 = arith.cmpi ne, %10, %c0_i32_9 : i32
    scf.if %11 {
      %c0_10 = arith.constant 0 : index
      %c0_11 = arith.constant 0 : index
      %12 = vector.load %arg7[%c0_10, %c0_11] : memref<16x32xf32, #tpu.memory_space<vmem>>, vector<16x32xf32>
      %c0_12 = arith.constant 0 : index
      %c0_13 = arith.constant 0 : index
      %13 = vector.load %arg5[%c0_12, %c0_13] : memref<1x32xf32, #tpu.memory_space<vmem>>, vector<1x32xf32>
      %14 = vector.broadcast %13 : vector<1x32xf32> to vector<16x32xf32>
      %15 = arith.addf %12, %14 : vector<16x32xf32>
      %c0_14 = arith.constant 0 : index
      %c0_15 = arith.constant 0 : index
      %16 = vector.load %arg6[%c0_14, %c0_15] : memref<16x32xf32, #tpu.memory_space<vmem>>, vector<16x32xf32>
      tpu.vector_store %arg6[%c0_14, %c0_15], %15 {strides = array<i32>} : memref<16x32xf32, #tpu.memory_space<vmem>>, vector<16x32xf32>,
    } else {
    }
    return
  }
  func.func @transform_0(%arg0: i32, %arg1: i32, %arg2: i32) -> (i32, i32) {
    %c0_i32 = arith.constant 0 : i32
    return %arg0, %arg2 : i32, i32
  }
  func.func @transform_1(%arg0: i32, %arg1: i32, %arg2: i32) -> (i32, i32) {
    %c0_i32 = arith.constant 0 : i32
    return %arg2, %arg1 : i32, i32
  }
  func.func @transform_2(%arg0: i32, %arg1: i32, %arg2: i32) -> (i32, i32) {
    %c0_i32 = arith.constant 0 : i32
    %c0_i32_0 = arith.constant 0 : i32
    return %c0_i32, %arg1 : i32, i32
  }
  func.func @transform_3(%arg0: i32, %arg1: i32, %arg2: i32) -> (i32, i32) {
    %c0_i32 = arith.constant 0 : i32
    return %arg0, %arg1 : i32, i32
  }
}

</mosaic_0001>

<bundles_post_ra>
// kernel: multi_head_attention.6
= control target key start
LH: loop header
LB: loop body
LE: loop exit
PB: predicated region body
PF: predicated region fallthrough
CT: control target
= control target key end

     0   :  { %8 = vsyncpa [#allocation4], 0  ;;  %s276_s0 = inlined_call_operand.hbm [shape: f32[16,32], index: 0, kind: input, shape index: {}]   ;;  %s277_s1 = inlined_call_operand.hbm [shape: bf16[32,32], index: 1, kind: input, shape index: {}]   ;;  %s278_s2 = inlined_call_operand.hbm [shape: f32[1,32], index: 2, kind: input, shape index: {}]   ;;  %s279_s3 = inlined_call_operand.vmem [shape: bf16[16,32], index: 3, kind: output, shape index: {}]  }
   0x1   :  { %9 = vsyncpa [#allocation6], 0  ;;  %s27_s14 = sshll.u32 %s277_s1, 4  ;;  %s228_s15 = smov [#allocation5]   ;;  %s28_s14 = int_to_ptr.hbm [resolvable:$true] %s27_s14 }
   0x2   :  { %s29_s16 = sshll.u32 %s228_s15, 4  ;;  %s14_s19 = sshll.u32 %s276_s0, 4  ;;  %s30_s16 = int_to_ptr.vmem [resolvable:$true] %s29_s16  ;;  %s15_s19 = int_to_ptr.hbm [resolvable:$true] %s14_s19 }
   0x3   :  { %s229_s20 = smov 64   ;;  %s230_s21 = smov 4  }
   0x4   :  { %35 = dma.hbm_to_vmem [thread:$0]  %s28_s14, 256, %s30_s16, [#allocation6], %s229_s20, %s229_s20, %s230_s21  }
   0x5   :  { %s231_s22 = smov [#allocation3]   ;;  %s232_s24 = smov 128  }
   0x6   :  { %s16_s23 = sshll.u32 %s231_s22, 4  ;;  %s233_s25 = smov 8   ;;  %s17_s23 = int_to_ptr.vmem [resolvable:$true] %s16_s23 }
   0x7   :  { %22 = dma.hbm_to_vmem [thread:$0]  %s15_s19, 256, %s17_s23, [#allocation4], %s232_s24, %s232_s24, %s233_s25  }
   0x8   :  { %s41_s27 = sshll.u32 %s278_s2, 4  ;;  %s234_s28 = smov [#allocation7]   ;;  %s42_s27 = int_to_ptr.hbm [resolvable:$true] %s41_s27 }
   0x9   :  { %s43_s29 = sshll.u32 %s234_s28, 4  ;;  %s44_s29 = int_to_ptr.vmem [resolvable:$true] %s43_s29 }
   0xa   :  { %46 = dma.hbm_to_vmem [thread:$0]  %s42_s27, 16, %s44_s29, [#allocation6]  }
   0xb   :  { %224 = dma.done.wait [#allocation4], 256  }
   0xc   :  { %225 = vsyncadd [#allocation4], 4294967040 }
   0xd   :  { %226 = dma.done.wait [#allocation6], 272  }
   0xe   :  { %227 = vsyncadd [#allocation6], 4294967024  ;;  %vm64_vm0 = vcmask 261120   ;;  %v235_v0 = vmov 0.0   ;;  %v142_v1 = vld [vmem:[#allocation5 + $0x8] sm:$0xff]  ;;  %v141_v2 = vld [vmem:[#allocation5] sm:$0xff] }
   0xf   :  { %65 = vst.msk [vmem:[#allocation2] sm:$0xff] %vm64_vm0, %v235_v0  ;;  %98 = vmatpush.bf16.msra.mxu0 %v142_v1  ;;  %v67_v3 = vld [vmem:[#allocation3] sm:$0xff]  ;;  %v68_v4 = vld [vmem:[#allocation3 + $0x8] sm:$0xff]  ;;  %vm123_vm1 = vcmask 257024  }
  0x10   :  { %66 = vst.msk [vmem:[#allocation2 + $0x8] sm:$0xff] %vm64_vm0, %v235_v0  ;;  %v69_v5 = vpack.c.bf16 %v68_v4, %v67_v3  ;;  %v151_v10 = vld [vmem:[#allocation7] ss:$0 sm:$0xff] }
  0x13   :  { %99 = vmatpush.bf16.msra.mxu0 %v141_v2 }
  0x16   :  { %140 = vmatmul.msk.bf16.vlgmr.msra.gmra.mxu0 %vm64_vm0, %v69_v5  ;;  %v70_v6 = vld [vmem:[#allocation2] sm:$0xff] }
  0x17   :  { %v71_v9 = vld [vmem:[#allocation2 + $0x8] sm:$0xff] }
  0x93   :  { %v101_v7 = vpop.f32.mrf.mxu0 }
  0x94   :  { %v106_v8 = vadd.f32 %v101_v7, %v70_v6 }
  0x96   :  { %108 = vst.msk [vmem:[#allocation2] sm:$0xff] %vm64_vm0, %v106_v8 }
  0x9b   :  { %v103_v11 = vpop.f32.mrf.mxu0 }
  0x9c   :  { %v107_v12 = vadd.f32 %v103_v11, %v71_v9 }
  0x9d   :  { %v113_v13 = vld [vmem:[#allocation2] sm:$0xff] }
  0x9e   :  { %v119_v14 = vadd.f32 %v151_v10, %v113_v13  ;;  %109 = vst.msk [vmem:[#allocation2 + $0x8] sm:$0xff] %vm64_vm0, %v107_v12 }
  0xa0   :  { %v121_v15 = vpack.c.bf16 %v119_v14, %v119_v14 }
  0xa2   :  { %124 = vst.msk [vmem:[%s279_s3] sm:$0xf] %vm123_vm1, %v121_v15 }
  0xa5   :  { %v114_v16 = vld [vmem:[#allocation2 + $0x8] sm:$0xff] }
  0xa6   :  { %v120_v17 = vadd.f32 %v151_v10, %v114_v16 }
  0xa8   :  { %v122_v18 = vpack.c.bf16 %v120_v17, %v120_v17 }
  0xaa   :  { %125 = vst.msk [vmem:[%s279_s3 + $0x4] sm:$0xf] %vm123_vm1, %v122_v18 }
  0xab   :  { %130 = vsyncpa [#allocation4], 1 }
  0xac   :  { %131 = vsyncpa [#allocation6], 1 }

// kernel: multi_head_attention.5
= control target key start
LH: loop header
LB: loop body
LE: loop exit
PB: predicated region body
PF: predicated region fallthrough
CT: control target
= control target key end

     0   :  { %8 = vsyncpa [#allocation4], 0  ;;  %s234_s0 = inlined_call_operand.vmem [shape: f32[16,32], index: 0, kind: input, shape index: {}]   ;;  %s235_s1 = inlined_call_operand.hbm [shape: bf16[32,32], index: 1, kind: input, shape index: {}]   ;;  %s236_s2 = inlined_call_operand.hbm [shape: f32[1,32], index: 2, kind: input, shape index: {}]   ;;  %s237_s3 = inlined_call_operand.vmem [shape: bf16[16,32], index: 3, kind: output, shape index: {}]  }
   0x1   :  { %s16_s14 = sshll.u32 %s235_s1, 4  ;;  %s17_s14 = int_to_ptr.hbm [resolvable:$true] %s16_s14 }
   0x2   :  { %9 = vsyncpa [#allocation6], 0  ;;  %s186_s15 = smov [#allocation3]   ;;  %s30_s19 = sshll.u32 %s236_s2, 4  ;;  %s31_s19 = int_to_ptr.hbm [resolvable:$true] %s30_s19 }
   0x3   :  { %s18_s16 = sshll.u32 %s186_s15, 4  ;;  %s187_s20 = smov 64   ;;  %s19_s16 = int_to_ptr.vmem [resolvable:$true] %s18_s16 }
   0x4   :  { %s188_s21 = smov 4   ;;  %s189_s22 = smov [#allocation5]  }
   0x5   :  { %24 = dma.hbm_to_vmem [thread:$0]  %s17_s14, 256, %s19_s16, [#allocation4], %s187_s20, %s187_s20, %s188_s21  }
   0x6   :  { %s32_s23 = sshll.u32 %s189_s22, 4  ;;  %s33_s23 = int_to_ptr.vmem [resolvable:$true] %s32_s23 }
   0x7   :  { %35 = dma.hbm_to_vmem [thread:$0]  %s31_s19, 16, %s33_s23, [#allocation6]  }
   0x8   :  { %182 = dma.done.wait [#allocation4], 256  }
   0x9   :  { %183 = vsyncadd [#allocation4], 4294967040 }
   0xa   :  { %184 = dma.done.wait [#allocation6], 16  }
   0xb   :  { %185 = vsyncadd [#allocation6], 4294967280  ;;  %vm49_vm0 = vcmask 261120   ;;  %v190_v0 = vmov 0.0   ;;  %v127_v1 = vld [vmem:[#allocation3 + $0x8] sm:$0xff]  ;;  %v126_v2 = vld [vmem:[#allocation3] sm:$0xff] }
   0xc   :  { %50 = vst.msk [vmem:[#allocation2] sm:$0xff] %vm49_vm0, %v190_v0  ;;  %83 = vmatpush.bf16.msra.mxu0 %v127_v1  ;;  %v52_v3 = vld [vmem:[%s234_s0] sm:$0xff]  ;;  %v53_v4 = vld [vmem:[%s234_s0 + $0x8] sm:$0xff]  ;;  %vm108_vm1 = vcmask 257024  }
   0xd   :  { %51 = vst.msk [vmem:[#allocation2 + $0x8] sm:$0xff] %vm49_vm0, %v190_v0  ;;  %v54_v5 = vpack.c.bf16 %v53_v4, %v52_v3  ;;  %v133_v10 = vld [vmem:[#allocation5] ss:$0 sm:$0xff] }
  0x10   :  { %84 = vmatpush.bf16.msra.mxu0 %v126_v2 }
  0x13   :  { %125 = vmatmul.msk.bf16.vlgmr.msra.gmra.mxu0 %vm49_vm0, %v54_v5  ;;  %v55_v6 = vld [vmem:[#allocation2] sm:$0xff] }
  0x14   :  { %v56_v9 = vld [vmem:[#allocation2 + $0x8] sm:$0xff] }
  0x90   :  { %v86_v7 = vpop.f32.mrf.mxu0 }
  0x91   :  { %v91_v8 = vadd.f32 %v86_v7, %v55_v6 }
  0x93   :  { %93 = vst.msk [vmem:[#allocation2] sm:$0xff] %vm49_vm0, %v91_v8 }
  0x98   :  { %v88_v11 = vpop.f32.mrf.mxu0 }
  0x99   :  { %v92_v12 = vadd.f32 %v88_v11, %v56_v9 }
  0x9a   :  { %v98_v13 = vld [vmem:[#allocation2] sm:$0xff] }
  0x9b   :  { %v104_v14 = vadd.f32 %v133_v10, %v98_v13  ;;  %94 = vst.msk [vmem:[#allocation2 + $0x8] sm:$0xff] %vm49_vm0, %v92_v12 }
  0x9d   :  { %v106_v15 = vpack.c.bf16 %v104_v14, %v104_v14 }
  0x9f   :  { %109 = vst.msk [vmem:[%s237_s3] sm:$0xf] %vm108_vm1, %v106_v15 }
  0xa2   :  { %v99_v16 = vld [vmem:[#allocation2 + $0x8] sm:$0xff] }
  0xa3   :  { %v105_v17 = vadd.f32 %v133_v10, %v99_v16 }
  0xa5   :  { %v107_v18 = vpack.c.bf16 %v105_v17, %v105_v17 }
  0xa7   :  { %110 = vst.msk [vmem:[%s237_s3 + $0x4] sm:$0xf] %vm108_vm1, %v107_v18 }
  0xa8   :  { %115 = vsyncpa [#allocation4], 1 }
  0xa9   :  { %116 = vsyncpa [#allocation6], 1 }

// kernel: multi_head_attention.9
= control target key start
LH: loop header
LB: loop body
LE: loop exit
PB: predicated region body
PF: predicated region fallthrough
CT: control target
= control target key end

     0   :  { %vm20_vm0 = vcmask 261120   ;;  %v148_v1 = vmov 0.0   ;;  %s194_s0 = inlined_call_operand.vmem [shape: bf16[16,32], index: 0, kind: input, shape index: {}]   ;;  %s195_s1 = inlined_call_operand.vmem [shape: bf16[32,32], index: 1, kind: input, shape index: {}]   ;;  %s196_s2 = inlined_call_operand.vmem [shape: f32[1,32], index: 2, kind: input, shape index: {}]   ;;  %s197_s3 = inlined_call_operand.hbm [shape: f32[16,32], index: 3, kind: output, shape index: {}]  }
   0x1   :  { %v116_v0 = vld [vmem:[%s195_s1 + $0x8] sm:$0xff]  ;;  %21 = vst.msk [vmem:[#allocation2] sm:$0xff] %vm20_vm0, %v148_v1 }
   0x2   :  { %8 = vsyncpa [#allocation4], 0  ;;  %58 = vmatpush.bf16.msra.mxu0 %v116_v0  ;;  %v115_v2 = vld [vmem:[%s195_s1] sm:$0xff]  ;;  %22 = vst.msk [vmem:[#allocation2 + $0x8] sm:$0xff] %vm20_vm0, %v148_v1  ;;  %s89_s22 = sshll.u32 %s197_s3, 4  ;;  %s151_s23 = smov 8   ;;  %s90_s22 = int_to_ptr.hbm [resolvable:$true] %s89_s22 }
   0x3   :  { %v114_v3 = vld [vmem:[%s194_s0] sm:$0xff]  ;;  %s149_s0 = smov [#allocation3]  }
   0x4   :  { %v121_v8 = vld [vmem:[%s196_s2] ss:$0 sm:$0xff]  ;;  %s87_s1 = sshll.u32 %s149_s0, 4  ;;  %s150_s2 = smov 128   ;;  %s88_s1 = int_to_ptr.vmem [resolvable:$true] %s87_s1 }
   0x6   :  { %59 = vmatpush.bf16.msra.mxu0 %v115_v2 }
   0x8   :  { %v25_v4 = vld [vmem:[#allocation2] sm:$0xff] }
   0x9   :  { %113 = vmatmul.msk.bf16.vlgmr.msra.gmra.mxu0 %vm20_vm0, %v114_v3  ;;  %v26_v7 = vld [vmem:[#allocation2 + $0x8] sm:$0xff] }
  0x86   :  { %v61_v5 = vpop.f32.mrf.mxu0 }
  0x87   :  { %v66_v6 = vadd.f32 %v61_v5, %v25_v4 }
  0x89   :  { %68 = vst.msk [vmem:[#allocation2] sm:$0xff] %vm20_vm0, %v66_v6 }
  0x8e   :  { %v63_v9 = vpop.f32.mrf.mxu0 }
  0x8f   :  { %v67_v10 = vadd.f32 %v63_v9, %v26_v7 }
  0x90   :  { %v73_v11 = vld [vmem:[#allocation2] sm:$0xff] }
  0x91   :  { %69 = vst.msk [vmem:[#allocation2 + $0x8] sm:$0xff] %vm20_vm0, %v67_v10  ;;  %v79_v12 = vadd.f32 %v121_v8, %v73_v11 }
  0x93   :  { %81 = vst.msk [vmem:[#allocation3] sm:$0xff] %vm20_vm0, %v79_v12 }
  0x98   :  { %v74_v13 = vld [vmem:[#allocation2 + $0x8] sm:$0xff] }
  0x99   :  { %v80_v14 = vadd.f32 %v121_v8, %v74_v13 }
  0x9b   :  { %82 = vst.msk [vmem:[#allocation3 + $0x8] sm:$0xff] %vm20_vm0, %v80_v14 }
  0x9c   :  { %95 = dma.vmem_to_hbm [thread:$0]  %s88_s1, 256, %s90_s22, [#allocation4], %s150_s2, %s150_s2, %s151_s23  }
  0x9d   :  { %146 = dma.done.wait [#allocation4], 256  }
  0x9e   :  { %147 = vsyncadd [#allocation4], 4294967040 }
  0x9f   :  { %100 = vsyncpa [#allocation4], 1 }

// kernel: multi_head_attention.8
= control target key start
LH: loop header
LB: loop body
LE: loop exit
PB: predicated region body
PF: predicated region fallthrough
CT: control target
= control target key end

     0   :  { %s994_s15 = smov 0   ;;  %s996_s16 = smov 0   ;;  %s1140_s0 = inlined_call_operand.vmem [shape: bf16[2,8,32], index: 0, kind: input, shape index: {}]   ;;  %s1141_s1 = inlined_call_operand.vmem [shape: bf16[2,8,32], index: 1, kind: input, shape index: {}]   ;;  %s1142_s2 = inlined_call_operand.vmem [shape: bf16[2,8,32], index: 2, kind: input, shape index: {}]   ;;  %s1143_s3 = inlined_call_operand.vmem [shape: s32[2,8,8], index: 3, kind: input, shape index: {}]   ;;  %s1144_s4 = inlined_call_operand.vmem [shape: bf16[2,8,32], index: 4, kind: output, shape index: {}]  }
   0x1   :  { %s998_s17 = smov 0  }
   0x2 LB: > { %s33_s18 = sadd.s32 1, %s954_s16  ;;  %p860_p0 = scmp.ge.s32.totalorder %s958_s17, 1  ;;  %s958_s17 = sphi %s998_s17, %s14_s17   ;;  %s954_s16 = sphi %s996_s16, %s1146_s16   ;;  %s950_s15 = sphi %s994_s15, %s1145_s15  }
   0x3   : > { %p35_p1 = scmp.ge.s32.totalorder %s33_s18, 2  ;;  %p234_p2 = scmp.lt.s32.totalorder %s958_s17, 3 }
   0x5   : > { %s1148_s18 = smov (%p35_p1, %s33_s18), 0  ;;  %p235_p3 = pnand %p860_p0, %p234_p2 }
   0x6   : > { %p288_p4 = scmp.lt.s32.totalorder (!%p235_p3), %s950_s15, 1  ;;  %s962_s30 = smov (!%p235_p3), 112  }
   0x7   : > { %238 = sbr.rel (%p235_p3) target bundleno = 1179 (0x49b), region = 36  ;;  %s963_s5 = smov (!%p235_p3), 120  }
   0x8   : > { %s964_s6 = smov (!%p235_p3), 104   ;;  %s966_s10 = smov (!%p235_p3), 8  }
   0x9   : > { %s967_s11 = smov (!%p235_p3), 16   ;;  %s968_s12 = smov (!%p235_p3), 24  }
   0xc   : > { %s1150_s15 = smov (!%p288_p4, %s950_s15), 1  ;;  %vm348_vm0 = vcmask 64512   ;;  %vm331_vm1 = vcmask 7168   ;;  %v960_v3 = vmov -inf   ;;  %v961_v4 = vmov 0.0  }
   0xd   : > { %s1012_s19 = sshll.u32 %s1150_s15, 2  ;;  %332 = vst.msk [vmem:[#allocation2] sm:$0xff] %vm331_vm1, %v960_v3  ;;  %s864_s26 = sshll.u32 %s1150_s15, 3  ;;  %v965_v15 = vmov 0   ;;  %vm403_vm3 = vcmask 1043456   ;;  %vm340_vm4 = vcmask 261120  }
   0xe   : > { %s301_s22 = scalar_lea.vmem %s1141_s1, %s1012_s19  ;;  %s294_s25 = scalar_lea.vmem %s1140_s0, %s1012_s19  ;;  %333 = vst.msk [vmem:[#allocation2 + $0x8] sm:$0xff] %vm331_vm1, %v960_v3  ;;  %909 = vset.pattern.permute.xlu1 %v965_v15  ;;  %910 = vset.pattern.permute.xlu2 %v965_v15  ;;  %vm514_vm5 = vcmask 130112   ;;  %vm599_vm6 = vcmask 195712   ;;  %vm684_vm7 = vcmask 261312   ;;  %vm724_vm8 = vcmask 130048  }
   0xf   : > { %v343_v0 = vld [vmem:[%s301_s22] sm:$0xf]  ;;  %334 = vst.msk [vmem:[#allocation2 + $0x10] sm:$0xff] %vm331_vm1, %v960_v3  ;;  %s318_s29 = scalar_lea.vmem %s1143_s3, %s864_s26  ;;  %911 = vset.pattern.permute.xlu0 %v965_v15  ;;  %s308_s9 = scalar_lea.vmem %s1142_s2, %s1012_s19  ;;  %vm726_vm9 = vcmask 195584   ;;  %vm729_vm10 = vcmask 257024  }
  0x10   : > { %v353_v1 = vsel %vm348_vm0, %v343_v0, 0  ;;  %v342_v2 = vld [vmem:[%s294_s25] sm:$0xf]  ;;  %335 = vst.msk [vmem:[#allocation2 + $0x18] sm:$0xff] %vm331_vm1, %v960_v3  ;;  %v429_v10 = vunpack.c.l.b16 %v343_v0  ;;  %s325_s15 = scalar_lea.vmem %s1144_s4, %s1012_s19 }
  0x11   : > { %362 = vmatpush.bf16.xpose.msra.mxu0 %v353_v1  ;;  %336 = vst.msk [vmem:[#allocation3] sm:$0xff] %vm331_vm1, %v961_v4  ;;  %v345_v5 = vld [vmem:[%s318_s29] sm:$0xff]  ;;  %v424_v13 = vunpack.c.l.b16 %v342_v2 }
  0x12   : > { %337 = vst.msk [vmem:[#allocation3 + $0x8] sm:$0xff] %vm331_vm1, %v961_v4  ;;  %vm346_vm2 = vcmp.ne.s32.totalorder %v345_v5, 0  ;;  %v430_v12 = vpack.c.b16 %v429_v10, %v429_v10  ;;  %v344_v22 = vld [vmem:[%s308_s9] sm:$0xf] }
  0x13   : > { %338 = vst.msk [vmem:[#allocation3 + $0x10] sm:$0xff] %vm331_vm1, %v961_v4  ;;  %v1040_v6 = vsel %vm346_vm2, -10000.0, %v961_v4  ;;  %v425_v14 = vpack.c.b16 %v424_v13, %v424_v13  ;;  %v405_v23 = vsel %vm403_vm3, %v344_v22, 0  ;;  %v486_v49 = vunpack.c.l.b16 %v344_v22 }
  0x14   : > { %339 = vst.msk [vmem:[#allocation3 + $0x18] sm:$0xff] %vm331_vm1, %v961_v4  ;;  %519 = vrot.lane.b32.xlu2 %v430_v12, %s962_s30  ;;  %v1048_v16 = vld [vmem:[#allocation2] sm:$0xff]  ;;  %414 = vmatpush.bf16.msra.mxu1 %v405_v23 }
  0x15   : > { %v487_v51 = vpack.c.b16 %v486_v49, %v486_v49  ;;  %v453_v52 = vld [vmem:[#allocation2 + $0x8] sm:$0xff]  ;;  %341 = vst.msk [vmem:[#allocation4] sm:$0xff] %vm340_vm4, %v961_v4 }
  0x16   : > { %v541_v59 = vld [vmem:[#allocation2 + $0x10] sm:$0xff] }
  0x17   : > { %v626_v55 = vld [vmem:[#allocation2 + $0x18] sm:$0xff] }
  0x18   : > { %866 = vmatmul.msk.bf16.vlgmr.msra.gmra.mxu0 %vm348_vm0, %v342_v2 }
  0x1c   : > { %517 = vrot.lane.b32.xlu2 %v425_v14, %s962_s30 }
  0x24   : > { %602 = vrot.lane.b32.xlu2 %v425_v14, %s964_s6 }
  0x6e   : > { %v520_v24 = vpop.permute.xlu2 %519 }
  0x6f   : > { %v525_v25 = vsel %vm348_vm0, %v520_v24, 0 }
  0x70   : > { %534 = vmatpush.bf16.xpose.msrb.mxu1 %v525_v25 }
  0x76   : > { %v518_v32 = vpop.permute.xlu2 %517 }
  0x7e   : > { %v603_v35 = vpop.permute.xlu2 %602 }
  0x95   : > { %v364_v7 = vpop.f32.mrf.mxu0 }
  0x96   : > { %v365_v8 = vadd.f32 %v364_v7, %v1040_v6 }
  0x98   : > { %v369_v9 = vsel %vm348_vm0, %v365_v8, -inf }
  0x99   : > { %370 = vmax.xlane.f32.xlu0 %v369_v9 }
  0x9d   : > { %v366_v11 = vpop.f32.mrf.mxu0 }
  0xad   : > { %431 = vrot.lane.b32.xlu0 %v430_v12, %s963_s5 }
 0x10c   : > { %v371_v17 = vpop.xlane.xlu0 %370 }
 0x10d   : > { %v1051_v18 = vmax.f32 %v1048_v16, %v371_v17 }
 0x10f   : > { %v373_v19 = vsub.f32 %v1048_v16, %v1051_v18  ;;  %422 = vst.msk [vmem:[#allocation2] sm:$0xff] %vm331_vm1, %v1051_v18  ;;  %378 = vperm.xlu1 %909, %v1051_v18  }
 0x111   : > { %v374_v61 = vmul.f32 1.442695, %v373_v19 }
 0x117   : > { %426 = vrot.lane.b32.xlu1 %v425_v14, %s963_s5 }
 0x11f   : > { %604 = vrot.lane.b32.xlu1 %v430_v12, %s964_s6  ;;  %v432_v20 = vpop.permute.xlu0 %431 }
 0x120   : > { %v437_v21 = vsel %vm348_vm0, %v432_v20, 0 }
 0x121   : > { %446 = vmatpush.bf16.xpose.msra.mxu2 %v437_v21  ;;  %v392_v21 = vld [vmem:[#allocation4] sm:$0xff] }
 0x181   : > { %v379_v26 = vpop.permute.xlu1 %378 }
 0x182   : > { %v381_v27 = vsub.f32 %v365_v8, %v379_v26 }
 0x184   : > { %v382_v28 = vmul.f32 1.442695, %v381_v27 }
 0x186   : > { %912 = vpow2.f32 %v382_v28 }
 0x187   : > { %914 = vpow2.f32 %v374_v61 }
 0x189   : > { %v427_v29 = vpop.permute.xlu1 %426 }
 0x18a   : > { %868 = vmatmul.msk.bf16.vlgmr.msra.gmra.mxu2 %vm348_vm0, %v427_v29 }
 0x18c   : > { %v913_v30 = vpop.eup %912 }
 0x18d   : > { %v399_v31 = vpack.c.bf16 %v913_v30, %v913_v30  ;;  %v915_v1 = vpop.eup %914  ;;  %v386_v3 = vsel %vm348_vm0, %v913_v30, 0.0 }
 0x18f   : > { %867 = vmatmul.msk.bf16.vlgmr.msra.gmra.mxu1 %vm348_vm0, %v399_v31 }
 0x191   : > { %v605_v33 = vpop.permute.xlu1 %604 }
 0x192   : > { %v610_v34 = vsel %vm348_vm0, %v605_v33, 0 }
 0x193   : > { %619 = vmatpush.bf16.xpose.msrb.mxu0 %v610_v34 }
 0x19a   : > { %872 = vmatmul.msk.bf16.vlgmr.msrb.gmra.mxu0 %vm348_vm0, %v603_v35 }
 0x19f   : > { %870 = vmatmul.msk.bf16.vlgmr.msrb.gmra.mxu1 %vm348_vm0, %v518_v32 }
 0x20c   : > { %v1072_v36 = vpop.f32.mrf.mxu1 }
 0x20d   : > { %v448_v37 = vpop.f32.mrf.mxu2 }
 0x20e   : > { %v1075_v38 = vadd.f32 %v448_v37, %v1040_v6 }
 0x210   : > { %v454_v39 = vsel %vm348_vm0, %v1075_v38, -inf }
 0x211   : > { %455 = vmax.xlane.f32.xlu1 %v454_v39 }
 0x214   : > { %v418_v40 = vpop.f32.mrf.mxu1 }
 0x215   : > { %v450_v41 = vpop.f32.mrf.mxu2 }
 0x217   : > { %v621_v42 = vpop.f32.mrf.mxu0 }
 0x218   : > { %v1080_v43 = vadd.f32 %v621_v42, %v1040_v6  ;;  %v470_v42 = vld [vmem:[#allocation3 + $0x8] sm:$0xff] }
 0x21a   : > { %v627_v44 = vsel %vm348_vm0, %v1080_v43, -inf }
 0x21b   : > { %628 = vmax.xlane.f32.xlu0 %v627_v44 }
 0x21c   : > { %v536_v45 = vpop.f32.mrf.mxu1 }
 0x21d   : > { %v1085_v46 = vadd.f32 %v536_v45, %v1040_v6 }
 0x21f   : > { %v542_v47 = vsel %vm348_vm0, %v1085_v46, -inf  ;;  %v623_v48 = vpop.f32.mrf.mxu0 }
 0x220   : > { %543 = vmax.xlane.f32.xlu2 %v542_v47  ;;  %v643_v48 = vld [vmem:[#allocation3 + $0x18] sm:$0xff] }
 0x224   : > { %v538_v50 = vpop.f32.mrf.mxu1 }
 0x22a   : > { %488 = vrot.lane.b32.xlu1 %v487_v51, %s963_s5 }
 0x284   : > { %v456_v53 = vpop.xlane.xlu1 %455 }
 0x285   : > { %v457_v54 = vmax.f32 %v453_v52, %v456_v53 }
 0x287   : > { %516 = vst.msk [vmem:[#allocation2 + $0x8] sm:$0xff] %vm331_vm1, %v457_v54  ;;  %463 = vperm.xlu2 %910, %v457_v54   ;;  %v458_v63 = vsub.f32 %v453_v52, %v457_v54 }
 0x289   : > { %v459_v0 = vmul.f32 1.442695, %v458_v63 }
 0x28b   : > { %916 = vpow2.f32 %v459_v0 }
 0x28e   : > { %v629_v56 = vpop.xlane.xlu0 %628 }
 0x28f   : > { %v630_v57 = vmax.f32 %v626_v55, %v629_v56  ;;  %573 = vrot.lane.b32.xlu2 %v487_v51, %s962_s30 }
 0x291   : > { %v631_v58 = vsub.f32 %v626_v55, %v630_v57  ;;  %686 = vst.msk [vmem:[#allocation2 + $0x18] sm:$0xff] %vm331_vm1, %v630_v57  ;;  %636 = vperm.xlu1 %909, %v630_v57   ;;  %v1098_v2 = vpop.eup %916 }
 0x293   : > { %v544_v60 = vpop.xlane.xlu2 %543  ;;  %v632_v9 = vmul.f32 1.442695, %v631_v58 }
 0x294   : > { %v545_v62 = vmax.f32 %v541_v59, %v544_v60 }
 0x296   : > { %601 = vst.msk [vmem:[#allocation2 + $0x10] sm:$0xff] %vm331_vm1, %v545_v62  ;;  %551 = vperm.xlu0 %911, %v545_v62   ;;  %v546_v5 = vsub.f32 %v541_v59, %v545_v62 }
 0x297   : > { %658 = vrot.lane.b32.xlu2 %v487_v51, %s964_s6 }
 0x298   : > { %v547_v6 = vmul.f32 1.442695, %v546_v5 }
 0x29a   : > { %918 = vpow2.f32 %v547_v6  ;;  %v558_v6 = vld [vmem:[#allocation3 + $0x10] sm:$0xff] }
 0x29b   : > { %920 = vpow2.f32 %v632_v9 }
 0x29c   : > { %v489_v7 = vpop.permute.xlu1 %488 }
 0x29d   : > { %v494_v8 = vsel %vm403_vm3, %v489_v7, 0 }
 0x29e   : > { %503 = vmatpush.bf16.msra.mxu3 %v494_v8 }
 0x29f   : > { %395 = vperm.xlu2 %910, %v915_v1  }
 0x2a0   : > { %v1103_v10 = vpop.eup %918 }
 0x2a1   : > { %v921_v11 = vpop.eup %920  ;;  %v559_v9 = vmul.f32 %v1103_v10, %v558_v6 }
 0x2a2   : > { %v644_v49 = vmul.f32 %v921_v11, %v643_v48 }
 0x2a7   : > { %480 = vperm.xlu2 %910, %v1098_v2  }
 0x2bb   : > { %387 = vadd.xlane.f32.xlu1 %v386_v3 }
 0x2d4   : > { %568 = vperm.xlu1 %909, %v1103_v10  }
 0x2dc   : > { %653 = vperm.xlu1 %909, %v921_v11  }
 0x2e1   : > { %v464_v12 = vpop.permute.xlu2 %463 }
 0x2e2   : > { %v466_v13 = vsub.f32 %v1075_v38, %v464_v12 }
 0x2e4   : > { %v467_v14 = vmul.f32 1.442695, %v466_v13 }
 0x2e6   : > { %922 = vpow2.f32 %v467_v14 }
 0x2e9   : > { %v574_v15 = vpop.permute.xlu2 %573 }
 0x2ea   : > { %v579_v4 = vsel %vm403_vm3, %v574_v15, 0 }
 0x2eb   : > { %588 = vmatpush.bf16.msrb.mxu3 %v579_v4 }
 0x2ec   : > { %v923_v16 = vpop.eup %922 }
 0x2ed   : > { %v472_v17 = vsel %vm348_vm0, %v923_v16, 0.0  ;;  %v484_v18 = vpack.c.bf16 %v923_v16, %v923_v16 }
 0x2ee   : > { %473 = vadd.xlane.f32.xlu0 %v472_v17 }
 0x2ef   : > { %869 = vmatmul.msk.bf16.vlgmr.msra.gmra.mxu3 %vm348_vm0, %v484_v18 }
 0x2f1   : > { %v659_v19 = vpop.permute.xlu2 %658 }
 0x2f2   : > { %v664_v20 = vsel %vm403_vm3, %v659_v19, 0 }
 0x2f3   : > { %673 = vmatpush.bf16.msrb.mxu2 %v664_v20 }
 0x2f9   : > { %v396_v22 = vpop.permute.xlu2 %395 }
 0x2fa   : > { %v398_v23 = vmul.f32 %v396_v22, %v392_v21 }
 0x2fc   : > { %v420_v24 = vadd.f32 %v1072_v36, %v398_v23  ;;  %v384_v36 = vld [vmem:[#allocation3] sm:$0xff] }
 0x2fd   : > { %v385_v37 = vmul.f32 %v915_v1, %v384_v36 }
 0x2fe   : > { %421 = vst.msk [vmem:[#allocation4] sm:$0xff] %vm348_vm0, %v420_v24 }
 0x301   : > { %v481_v61 = vpop.permute.xlu2 %480 }
 0x303   : > { %v637_v25 = vpop.permute.xlu1 %636 }
 0x304   : > { %v639_v26 = vsub.f32 %v1080_v43, %v637_v25  ;;  %v471_v43 = vmul.f32 %v1098_v2, %v470_v42 }
 0x305   : > { %v477_v62 = vld [vmem:[#allocation4] sm:$0xff] }
 0x306   : > { %v640_v27 = vmul.f32 1.442695, %v639_v26  ;;  %v483_v63 = vmul.f32 %v481_v61, %v477_v62 }
 0x308   : > { %924 = vpow2.f32 %v640_v27  ;;  %v552_v28 = vpop.permute.xlu0 %551 }
 0x309   : > { %v554_v29 = vsub.f32 %v1085_v46, %v552_v28 }
 0x30b   : > { %v555_v30 = vmul.f32 1.442695, %v554_v29 }
 0x30d   : > { %926 = vpow2.f32 %v555_v30 }
 0x30e   : > { %v925_v31 = vpop.eup %924 }
 0x30f   : > { %v645_v32 = vsel %vm348_vm0, %v925_v31, 0.0  ;;  %v657_v33 = vpack.c.bf16 %v925_v31, %v925_v31 }
 0x310   : > { %646 = vadd.xlane.f32.xlu0 %v645_v32 }
 0x311   : > { %873 = vmatmul.msk.bf16.vlgmr.msrb.gmra.mxu2 %vm348_vm0, %v657_v33 }
 0x313   : > { %v927_v34 = vpop.eup %926 }
 0x314   : > { %v572_v35 = vpack.c.bf16 %v927_v34, %v927_v34  ;;  %v560_v55 = vsel %vm348_vm0, %v927_v34, 0.0 }
 0x316   : > { %871 = vmatmul.msk.bf16.vlgmr.msrb.gmra.mxu3 %vm348_vm0, %v572_v35 }
 0x32e   : > { %v388_v38 = vpop.xlane.xlu1 %387 }
 0x32f   : > { %v389_v39 = vadd.f32 %v388_v38, %v385_v37 }
 0x331   : > { %391 = vst.msk [vmem:[#allocation3] sm:$0xff] %vm331_vm1, %v389_v39 }
 0x338   : > { %v690_v40 = vld [vmem:[#allocation3] sm:$0xff] }
 0x339   : > { %928 = vrcp.f32 %v690_v40 }
 0x33f   : > { %v929_v41 = vpop.eup %928 }
 0x340   : > { %695 = vperm.xlu1 %909, %v929_v41  }
 0x346   : > { %v569_v3 = vpop.permute.xlu1 %568 }
 0x34e   : > { %v654_v13 = vpop.permute.xlu1 %653 }
 0x361   : > { %v474_v44 = vpop.xlane.xlu0 %473 }
 0x362   : > { %v475_v45 = vadd.f32 %v474_v44, %v471_v43 }
 0x364   : > { %476 = vst.msk [vmem:[#allocation3 + $0x8] sm:$0xff] %vm331_vm1, %v475_v45 }
 0x36b   : > { %v699_v53 = vld [vmem:[#allocation3 + $0x8] sm:$0xff] }
 0x36c   : > { %930 = vrcp.f32 %v699_v53 }
 0x372   : > { %v505_v46 = vpop.f32.mrf.mxu3  ;;  %v931_v58 = vpop.eup %930 }
 0x373   : > { %510 = vrot.lane.b32.xlu2 %v505_v46, %s966_s10 }
 0x37a   : > { %v507_v47 = vpop.f32.mrf.mxu3 }
 0x383   : > { %v647_v50 = vpop.xlane.xlu0 %646 }
 0x384   : > { %v648_v51 = vadd.f32 %v647_v50, %v644_v49 }
 0x386   : > { %649 = vst.msk [vmem:[#allocation3 + $0x18] sm:$0xff] %vm331_vm1, %v648_v51 }
 0x38d   : > { %v715_v57 = vld [vmem:[#allocation3 + $0x18] sm:$0xff] }
 0x38e   : > { %932 = vrcp.f32 %v715_v57 }
 0x394   : > { %v675_v52 = vpop.f32.mrf.mxu2  ;;  %v933_v60 = vpop.eup %932 }
 0x399   : > { %v590_v54 = vpop.f32.mrf.mxu3 }
 0x39a   : > { %595 = vrot.lane.b32.xlu0 %v590_v54, %s967_s11 }
 0x39c   : > { %v677_v56 = vpop.f32.mrf.mxu2  ;;  %561 = vadd.xlane.f32.xlu2 %v560_v55 }
 0x3a1   : > { %v592_v59 = vpop.f32.mrf.mxu3 }
 0x3a2   : > { %703 = vperm.xlu0 %911, %v931_v58  }
 0x3aa   : > { %719 = vperm.xlu0 %911, %v933_v60  }
 0x3b2   : > { %v696_v20 = vpop.permute.xlu1 %695 }
 0x3b4   : > { %680 = vrot.lane.b32.xlu2 %v675_v52, %s968_s12 }
 0x3cd   : > { %v511_v0 = vpop.permute.xlu2 %510 }
 0x3ce   : > { %v513_v1 = vadd.f32 %v511_v0, %v483_v63 }
 0x3d0   : > { %515 = vst.msk [vmem:[#allocation4] sm:$0xff] %vm514_vm5, %v513_v1 }
 0x3d7   : > { %v565_v2 = vld [vmem:[#allocation4] sm:$0xff] }
 0x3d8   : > { %v571_v5 = vmul.f32 %v569_v3, %v565_v2 }
 0x40c   : > { %v596_v7 = vpop.permute.xlu0 %595 }
 0x40d   : > { %v598_v8 = vadd.f32 %v596_v7, %v571_v5 }
 0x40f   : > { %600 = vst.msk [vmem:[#allocation4] sm:$0xff] %vm599_vm6, %v598_v8  ;;  %v562_v11 = vpop.xlane.xlu2 %561 }
 0x410   : > { %v563_v12 = vadd.f32 %v562_v11, %v559_v9 }
 0x412   : > { %564 = vst.msk [vmem:[#allocation3 + $0x10] sm:$0xff] %vm331_vm1, %v563_v12 }
 0x414   : > { %v704_v4 = vpop.permute.xlu0 %703 }
 0x416   : > { %v650_v14 = vld [vmem:[#allocation4] sm:$0xff] }
 0x417   : > { %v681_v15 = vpop.permute.xlu2 %680  ;;  %v656_v16 = vmul.f32 %v654_v13, %v650_v14 }
 0x419   : > { %v683_v17 = vadd.f32 %v681_v15, %v656_v16  ;;  %v707_v18 = vld [vmem:[#allocation3 + $0x10] sm:$0xff] }
 0x41a   : > { %934 = vrcp.f32 %v707_v18 }
 0x41b   : > { %685 = vst.msk [vmem:[#allocation4] sm:$0xff] %vm684_vm7, %v683_v17 }
 0x41c   : > { %v720_v24 = vpop.permute.xlu0 %719 }
 0x420   : > { %v935_v19 = vpop.eup %934 }
 0x421   : > { %711 = vperm.xlu1 %909, %v935_v19  }
 0x422   : > { %v692_v10 = vld [vmem:[#allocation4] sm:$0xff] }
 0x423   : > { %v698_v21 = vmul.f32 %v696_v20, %v692_v10  ;;  %v706_v22 = vmul.f32 %v704_v4, %v692_v10  ;;  %v722_v26 = vmul.f32 %v720_v24, %v692_v10 }
 0x425   : > { %v723_v27 = vsel %vm348_vm0, %v698_v21, %v706_v22 }
 0x493   : > { %v712_v23 = vpop.permute.xlu1 %711 }
 0x494   : > { %v714_v25 = vmul.f32 %v712_v23, %v692_v10 }
 0x496   : > { %v725_v28 = vsel %vm724_vm8, %v723_v27, %v714_v25 }
 0x497   : > { %v727_v29 = vsel %vm726_vm9, %v725_v28, %v722_v26 }
 0x498   : > { %v728_v30 = vpack.c.bf16 %v727_v29, %v727_v29 }
 0x49a   : > { %730 = vst.msk [vmem:[%s325_s15] sm:$0xf] %vm729_vm10, %v728_v30 }
 0x49b PF: > { %s14_s17 = sadd.s32 1, %s958_s17   ;;  %s1145_s15 = smov %s954_s16 }
 0x49c   : > { %p11_p5 = scmp.ge.s32.totalorder %s14_s17, 4   ;;  %s1146_s16 = smov %s1148_s18 }
 0x49e   :  { %13 = sbr.rel (!%p11_p5) target bundleno = 2 (0x2), region = 89 }

</bundles_post_ra>
